<compile_context>
chip_gen: v6e
topology: v6e:2x2x1
jax: 0.10.0
libtpu: 0.0.40
codegen_flags: <defaults>
</compile_context>

<pallas_src>
import functools
import math

import jax
import jax.numpy as jnp
from jax.experimental import pallas as pl
from jax.experimental.pallas import tpu as pltpu


def _round_up(x, m):
    return (x + m - 1) // m * m


# ----------------------------- RoPE helpers (host) -----------------------------

def rope_tables(S, HD):
    """cos/sin tables, (S, HD), rotate_half convention."""
    pos = jnp.arange(S, dtype=jnp.float32)[:, None]
    inv_freq = 1.0 / (10000.0 ** (jnp.arange(0, HD, 2, dtype=jnp.float32) / HD))
    ang = pos * inv_freq[None, :]
    cos = jnp.concatenate([jnp.cos(ang), jnp.cos(ang)], axis=-1)
    sin = jnp.concatenate([jnp.sin(ang), jnp.sin(ang)], axis=-1)
    return cos, sin


def rotate_half_matrix(HD):
    """P such that (row-vector) q @ P == rotate_half(q) == [-q2, q1]."""
    h = HD // 2
    P = jnp.zeros((HD, HD), jnp.float32)
    P = P.at[jnp.arange(h) + h, jnp.arange(h)].set(-1.0)
    P = P.at[jnp.arange(h), jnp.arange(h) + h].set(1.0)
    return P


# --------------------- weight packing (done ONCE, host side) --------------------

def pack_transformer_params(params):
    """Pad d_model -> 128, fold RoPE into the QKV weights, stack per-layer weights
    along a leading layer axis so one fused pallas_call can stream them."""
    D = params["embedding"].shape[1]
    H = params["layers"][0]["nhead"]
    HD = D // H
    DP = _round_up(D, 128)
    FF = params["layers"][0]["W1"].shape[0]          # 4*D
    FFP = _round_up(FF, 128)
    V = params["W_fc"].shape[0]
    VP = _round_up(V, 128)

    R = jnp.kron(jnp.eye(H, dtype=jnp.float32), rotate_half_matrix(HD))  # (D, D)

    def padw(w, r, c):
        return jnp.pad(w, ((0, r - w.shape[0]), (0, c - w.shape[1])))

    def padv(b, n):
        return jnp.pad(b, (0, n - b.shape[0]))

    wqkv_l, bqkv_l, wo_l, bo_l = [], [], [], []
    w1_l, b1_l, w2_l, b2_l, eps_l = [], [], [], [], []
    for lp in params["layers"]:
        Wq_t, Wk_t, Wv_t = lp["Wq"].T, lp["Wk"].T, lp["Wv"].T
        w_blocks = [Wq_t, Wk_t, Wv_t, Wq_t @ R, Wk_t @ R]
        b_blocks = [lp["bq"], lp["bk"], lp["bv"], lp["bq"] @ R, lp["bk"] @ R]
        wqkv = jnp.concatenate([padw(w, DP, DP) for w in w_blocks], axis=1)   # (DP, 5DP)
        bqkv = jnp.concatenate([padv(b, DP) for b in b_blocks], axis=0)       # (5DP,)
        wqkv_l.append(wqkv.astype(jnp.bfloat16))
        bqkv_l.append(bqkv.reshape(1, 5 * DP))
        wo_l.append(padw(lp["Wo"].T, DP, DP).astype(jnp.bfloat16))
        bo_l.append(padv(lp["bo"], DP).reshape(1, DP))
        w1_l.append(padw(lp["W1"].T, DP, FFP).astype(jnp.bfloat16))
        b1_l.append(padv(lp["b1"], FFP).reshape(1, FFP))
        w2_l.append(padw(lp["W2"].T, FFP, DP).astype(jnp.bfloat16))
        b2_l.append(padv(lp["b2"], DP).reshape(1, DP))
        eps_l.append(jnp.full((1, 1), lp["eps_exp"], jnp.float32))

    return dict(
        D=D, H=H, HD=HD, DP=DP, FFP=FFP, V=V, VP=VP, L=len(params["layers"]),
        embedding=jnp.pad(params["embedding"].astype(jnp.float32),
                          ((0, 0), (0, DP - D))),
        wqkv=jnp.stack(wqkv_l), bqkv=jnp.stack(bqkv_l),
        wo=jnp.stack(wo_l), bo=jnp.stack(bo_l),
        w1=jnp.stack(w1_l), b1=jnp.stack(b1_l),
        w2=jnp.stack(w2_l), b2=jnp.stack(b2_l),
        eps=jnp.stack(eps_l),
        wout=padw(params["W_fc"].T, DP, VP).astype(jnp.bfloat16),
        bout=padv(params["b_fc"], VP).reshape(1, VP),
        epsf=jnp.full((1, 1), params["eps_exp"], jnp.float32),
    )


# --------------------------------- fused kernel --------------------------------

def _fused_transformer_kernel(L, B, S, D, DP, HD,
                              x0_ref, cos_ref, sin_ref, causal_ref,
                              blockmask_ref, bones_ref,
                              wqkv_ref, bqkv_ref, wo_ref, bo_ref,
                              w1_ref, b1_ref, w2_ref, b2_ref, eps_ref,
                              wout_ref, bout_ref, epsf_ref,
                              o_ref, x_scr):
    f32, bf16 = jnp.float32, jnp.bfloat16
    HP = DP // HD                       # padded head count (pad heads are all-zero)
    C = HP * S
    rows = B * S
    inv_sqrt_hd = 1.0 / math.sqrt(HD)
    inv_sqrt2 = 1.0 / math.sqrt(2.0)
    inv_d = 1.0 / D                     # BasicNorm over the TRUE feature count

    l = pl.program_id(0)

    @pl.when(l == 0)
    def _():
        x_scr[...] = x0_ref[...]        # x lives in VMEM across all layers

    def mm(a, w):                       # bf16 MXU inputs, f32 accumulation
        return jnp.dot(a.astype(bf16), w, preferred_element_type=f32)

    def tile_heads(t):                  # (rows, DP) -> (B, C, DP): row c = t[b, c % S, :]
        t = t.reshape(B, 1, S, DP)
        t = jnp.broadcast_to(t, (B, HP, S, DP))
        return t.reshape(B, C, DP)

    x = x_scr[...]                      # (rows, DP) f32
    cos = cos_ref[...]
    sin = sin_ref[...]

    # --- fused QKV + pre-rotated Q/K projection (RoPE folded into the weights) ---
    proj = mm(x, wqkv_ref[0]) + bqkv_ref[0]                  # (rows, 5*DP)
    q = proj[:, 0 * DP:1 * DP] * cos + proj[:, 3 * DP:4 * DP] * sin
    k = proj[:, 1 * DP:2 * DP] * cos + proj[:, 4 * DP:5 * DP] * sin
    v = proj[:, 2 * DP:3 * DP]

    # --- all heads at once via block-diagonal K (no per-head loop, no lane slices) ---
    bm = blockmask_ref[...]                                   # (C, DP) 0/1 bf16
    kbd = tile_heads(k.astype(bf16)) * bm[None]               # (B, C, DP)
    sc = jnp.einsum('bqd,bcd->bqc', q.astype(bf16).reshape(B, S, DP), kbd,
                    preferred_element_type=f32)               # per-head scores on lanes
    sc = sc.reshape(rows, C) * inv_sqrt_hd + causal_ref[...]

    # softmax within each S-wide lane block (one block per head); subtracting the
    # per-row global max is exact for block-wise softmax (constants cancel per block)
    sc = sc - jnp.max(sc, axis=-1, keepdims=True)
    p = jnp.exp(sc)                                           # (rows, C)
    denom = jnp.dot(p, bones_ref[...], preferred_element_type=f32)   # block sums, broadcast
    p = p * pl.reciprocal(jnp.maximum(denom, 1e-30), approx=True)

    vbd = tile_heads(v.astype(bf16)) * bm[None]               # (B, C, DP)
    attn = jnp.einsum('bqc,bcd->bqd', p.reshape(B, S, C).astype(bf16), vbd,
                      preferred_element_type=f32).reshape(rows, DP)
    attn = mm(attn, wo_ref[0]) + bo_ref[0]                    # output projection

    x1 = x + attn                                             # residual 1

    # --- feed-forward: Linear -> exact GELU -> Linear --------------------------
    h1 = mm(x1, w1_ref[0]) + b1_ref[0]
    h1 = 0.5 * h1 * (1.0 + jax.lax.erf(h1 * inv_sqrt2))
    x2 = x1 + mm(h1, w2_ref[0]) + b2_ref[0]                   # residual 2

    # --- BasicNorm (pad columns are zero, divide by true D) --------------------
    y = x2 * jax.lax.rsqrt(jnp.sum(x2 * x2, axis=-1, keepdims=True) * inv_d
                           + eps_ref[0])
    x_scr[...] = y

    # --- last layer: final BasicNorm + fc_out into the resident output block ---
    @pl.when(l == L - 1)
    def _():
        yf = y * jax.lax.rsqrt(jnp.sum(y * y, axis=-1, keepdims=True) * inv_d
                               + epsf_ref[...])
        o_ref[...] = mm(yf, wout_ref[...]) + bout_ref[...]


# --------------------------------- wrapper (glue) -------------------------------

def transformer_forward(token_ids, packed):
    B, S = token_ids.shape
    D, DP, H, HD = packed["D"], packed["DP"], packed["H"], packed["HD"]
    FFP, V, VP, L = packed["FFP"], packed["V"], packed["VP"], packed["L"]
    HP = DP // HD
    C = HP * S
    rows = B * S
    assert rows % 8 == 0, "B*S must be a multiple of 8 (sublane tile)"

    # TODO(synk): embedding row-gather stays in XLA (a Pallas gather kernel is not
    # worth it at this size).
    x0 = jnp.take(packed["embedding"], token_ids.reshape(-1), axis=0)   # (rows, DP) f32

    # Shape-only constants: constant-fold under jit (no per-forward host work).
    cos_h, sin_h = rope_tables(S, HD)
    cos = jnp.tile(jnp.pad(jnp.tile(cos_h, (1, H)), ((0, 0), (0, DP - D))), (B, 1))
    sin = jnp.tile(jnp.pad(jnp.tile(sin_h, (1, H)), ((0, 0), (0, DP - D))), (B, 1))

    # Additive causal mask per head-block, tiled over batch rows: (rows, C).
    q_pos = jax.lax.broadcasted_iota(jnp.int32, (S, C), 0)
    k_pos = jax.lax.broadcasted_iota(jnp.int32, (S, C), 1) % S
    causal = jnp.tile(jnp.where(k_pos <= q_pos, 0.0, -1e9).astype(jnp.float32), (B, 1))

    # Block-diagonal head-selection mask for KBD/VBD: (C, DP).
    c_head = jax.lax.broadcasted_iota(jnp.int32, (C, DP), 0) // S
    d_head = jax.lax.broadcasted_iota(jnp.int32, (C, DP), 1) // HD
    blockmask = (c_head == d_head).astype(jnp.bfloat16)

    # Block-ones matrix for per-head softmax denominators: (C, C).
    ci = jax.lax.broadcasted_iota(jnp.int32, (C, C), 0) // S
    cj = jax.lax.broadcasted_iota(jnp.int32, (C, C), 1) // S
    bones = (ci == cj).astype(jnp.float32)

    args = (x0, cos, sin, causal, blockmask, bones,
            packed["wqkv"], packed["bqkv"], packed["wo"], packed["bo"],
            packed["w1"], packed["b1"], packed["w2"], packed["b2"], packed["eps"],
            packed["wout"], packed["bout"], packed["epsf"])

    def full2d(a):     # resident across all layer iterations (DMA'd once)
        return pl.BlockSpec(a.shape, lambda l: (0, 0))

    def per_layer(a):  # streamed / double-buffered per layer
        return pl.BlockSpec((1,) + a.shape[1:], lambda l: (l, 0, 0))

    in_specs = [full2d(x0), full2d(cos), full2d(sin), full2d(causal),
                full2d(blockmask), full2d(bones),
                per_layer(packed["wqkv"]), per_layer(packed["bqkv"]),
                per_layer(packed["wo"]), per_layer(packed["bo"]),
                per_layer(packed["w1"]), per_layer(packed["b1"]),
                per_layer(packed["w2"]), per_layer(packed["b2"]),
                per_layer(packed["eps"]),
                full2d(packed["wout"]), full2d(packed["bout"]), full2d(packed["epsf"])]

    kernel = functools.partial(_fused_transformer_kernel, L, B, S, D, DP, HD)

    flops = L * 2 * rows * (DP * 5 * DP + DP * C + C * C + C * DP + DP * DP
                            + DP * FFP + FFP * DP) + 2 * rows * DP * VP
    transc = L * rows * (C + FFP)
    bytes_accessed = sum(int(a.size) * a.dtype.itemsize for a in args) + rows * VP * 4

    out = pl.pallas_call(
        kernel,
        out_shape=jax.ShapeDtypeStruct((rows, VP), jnp.float32),
        grid=(L,),
        in_specs=in_specs,
        out_specs=pl.BlockSpec((rows, VP), lambda l: (0, 0)),
        scratch_shapes=[pltpu.VMEM((rows, DP), jnp.float32)],
        compiler_params=pltpu.CompilerParams(dimension_semantics=("arbitrary",)),
        cost_estimate=pl.CostEstimate(flops=flops, transcendentals=transc,
                                      bytes_accessed=bytes_accessed),
    )(*args)

    return out.reshape(B, S, VP)[:, :, :V]


# ----------------------------- pure-JAX reference -----------------------------

def reference_forward(token_ids, params):
    x = params["embedding"][token_ids].astype(jnp.float32)
    B, S, D = x.shape
    causal = jnp.triu(jnp.full((S, S), -1e9, dtype=jnp.float32), k=1)

    def basic_norm(u, eps_exp):
        return u * jax.lax.rsqrt(jnp.mean(u * u, -1, keepdims=True) + eps_exp)

    def rotate_half(u, hd):
        return jnp.concatenate([-u[..., hd // 2:], u[..., :hd // 2]], axis=-1)

    for lp in params["layers"]:
        H = lp["nhead"]
        HD = D // H
        cos, sin = rope_tables(S, HD)

        def one(xb, lp=lp, H=H, HD=HD, cos=cos, sin=sin):
            q = xb @ lp["Wq"].T + lp["bq"]
            k = xb @ lp["Wk"].T + lp["bk"]
            v = xb @ lp["Wv"].T + lp["bv"]
            qh = q.reshape(S, H, HD).transpose(1, 0, 2)
            kh = k.reshape(S, H, HD).transpose(1, 0, 2)
            vh = v.reshape(S, H, HD).transpose(1, 0, 2)
            qh = qh * cos + rotate_half(qh, HD) * sin
            kh = kh * cos + rotate_half(kh, HD) * sin
            s = jnp.einsum('hqd,hkd->hqk', qh, kh) / math.sqrt(HD) + causal
            p = jax.nn.softmax(s, axis=-1)
            o = jnp.einsum('hqk,hkd->hqd', p, vh).transpose(1, 0, 2).reshape(S, D)
            attn = o @ lp["Wo"].T + lp["bo"]
            x1 = xb + attn
            h1 = x1 @ lp["W1"].T + lp["b1"]
            h1 = 0.5 * h1 * (1.0 + jax.lax.erf(h1 / math.sqrt(2.0)))
            x2 = x1 + h1 @ lp["W2"].T + lp["b2"]
            return basic_norm(x2, lp["eps_exp"])

        x = jax.vmap(one)(x)

    x = basic_norm(x, params["eps_exp"])
    return x @ params["W_fc"].T + params["b_fc"]


# --------------------------------- main ---------------------------------

if __name__ == "__main__":
    B, S, D, H, V, L = 2, 16, 96, 12, 128, 2        # d_model=96 -> 12 heads of dim 8
    key = jax.random.PRNGKey(0)
    keys = iter(jax.random.split(key, 40))

    def linear(out_f, in_f):
        w = jax.random.normal(next(keys), (out_f, in_f), jnp.float32) / math.sqrt(in_f)
        b = 0.01 * jax.random.normal(next(keys), (out_f,), jnp.float32)
        return w, b

    embedding = jax.random.normal(next(keys), (V, D), jnp.float32)
    token_ids = jax.random.randint(next(keys), (B, S), 0, V)

    layers = []
    for _ in range(L):
        Wq, bq = linear(D, D); Wk, bk = linear(D, D)
        Wv, bv = linear(D, D); Wo, bo = linear(D, D)
        W1, b1 = linear(4 * D, D); W2, b2 = linear(D, 4 * D)
        layers.append(dict(nhead=H, Wq=Wq, bq=bq, Wk=Wk, bk=bk, Wv=Wv, bv=bv,
                           Wo=Wo, bo=bo, W1=W1, b1=b1, W2=W2, b2=b2,
                           eps_exp=0.25))           # BasicNorm eps=log(0.25) -> 0.25
    W_fc, b_fc = linear(V, D)
    params = dict(embedding=embedding, layers=layers,
                  eps_exp=0.25, W_fc=W_fc, b_fc=b_fc)

    packed = pack_transformer_params(params)         # hoisted: packed ONCE, not per forward
    fwd = jax.jit(functools.partial(transformer_forward, packed=packed))
    out = jax.block_until_ready(fwd(token_ids))

    ref = reference_forward(token_ids, params)
    diff = out - ref
    rel_l2 = float(jnp.linalg.norm(diff) / (jnp.linalg.norm(ref) + 1e-12))
    max_abs = float(jnp.max(jnp.abs(diff)))
    # tolerance sized for bf16 MXU inputs (f32 accumulation) across 2 layers + head
    assert rel_l2 < 2e-2, f"mismatch vs reference: rel_l2={rel_l2}, max_abs={max_abs}"
    print("KERNEL_OK")
</pallas_src>

<mosaic_0001>
module attributes {stable_mosaic.version = 11 : i64} {
  func.func @_fused_transformer_kernel(%arg0: i32, %arg1: memref<32x128xf32, #tpu.memory_space<vmem>>, %arg2: memref<32x128xf32, #tpu.memory_space<vmem>>, %arg3: memref<32x128xf32, #tpu.memory_space<vmem>>, %arg4: memref<32x256xf32, #tpu.memory_space<vmem>>, %arg5: memref<256x128xbf16, #tpu.memory_space<vmem>>, %arg6: memref<256x256xf32, #tpu.memory_space<vmem>>, %arg7: memref<1x128x640xbf16, #tpu.memory_space<vmem>>, %arg8: memref<1x1x640xf32, #tpu.memory_space<vmem>>, %arg9: memref<1x128x128xbf16, #tpu.memory_space<vmem>>, %arg10: memref<1x1x128xf32, #tpu.memory_space<vmem>>, %arg11: memref<1x128x384xbf16, #tpu.memory_space<vmem>>, %arg12: memref<1x1x384xf32, #tpu.memory_space<vmem>>, %arg13: memref<1x384x128xbf16, #tpu.memory_space<vmem>>, %arg14: memref<1x1x128xf32, #tpu.memory_space<vmem>>, %arg15: memref<1x1x1xf32, #tpu.memory_space<vmem>>, %arg16: memref<128x128xbf16, #tpu.memory_space<vmem>>, %arg17: memref<1x128xf32, #tpu.memory_space<vmem>>, %arg18: memref<1x1xf32, #tpu.memory_space<vmem>>, %arg19: memref<32x128xf32, #tpu.memory_space<vmem>>, %arg20: memref<32x128xf32, #tpu.memory_space<vmem>>) attributes {dimension_semantics = [#tpu.dimension_semantics<arbitrary>], iteration_bounds = array<i64: 2>, scalar_prefetch = 0 : i64, scratch_operands = 1 : i64, tpu.core_type = #tpu.core_type<tc>, window_params = [{pipeline_mode = #tpu.pipeline_mode<synchronous>, transform_indices = @transform_0, window_bounds = array<i64: 32, 128>}, {pipeline_mode = #tpu.pipeline_mode<synchronous>, transform_indices = @transform_1, window_bounds = array<i64: 32, 128>}, {pipeline_mode = #tpu.pipeline_mode<synchronous>, transform_indices = @transform_2, window_bounds = array<i64: 32, 128>}, {pipeline_mode = #tpu.pipeline_mode<synchronous>, transform_indices = @transform_3, window_bounds = array<i64: 32, 256>}, {pipeline_mode = #tpu.pipeline_mode<synchronous>, transform_indices = @transform_4, window_bounds = array<i64: 256, 128>}, {pipeline_mode = #tpu.pipeline_mode<synchronous>, transform_indices = @transform_5, window_bounds = array<i64: 256, 256>}, {transform_indices = @transform_6, window_bounds = array<i64: 1, 128, 640>}, {transform_indices = @transform_7, window_bounds = array<i64: 1, 1, 640>}, {transform_indices = @transform_8, window_bounds = array<i64: 1, 128, 128>}, {transform_indices = @transform_9, window_bounds = array<i64: 1, 1, 128>}, {transform_indices = @transform_10, window_bounds = array<i64: 1, 128, 384>}, {transform_indices = @transform_11, window_bounds = array<i64: 1, 1, 384>}, {transform_indices = @transform_12, window_bounds = array<i64: 1, 384, 128>}, {transform_indices = @transform_13, window_bounds = array<i64: 1, 1, 128>}, {transform_indices = @transform_14, window_bounds = array<i64: 1, 1, 1>}, {pipeline_mode = #tpu.pipeline_mode<synchronous>, transform_indices = @transform_15, window_bounds = array<i64: 128, 128>}, {pipeline_mode = #tpu.pipeline_mode<synchronous>, transform_indices = @transform_16, window_bounds = array<i64: 1, 128>}, {pipeline_mode = #tpu.pipeline_mode<synchronous>, transform_indices = @transform_17, window_bounds = array<i64: 1, 1>}, {pipeline_mode = #tpu.pipeline_mode<synchronous>, transform_indices = @transform_18, window_bounds = array<i64: 32, 128>}]} {
    %c0_i32 = arith.constant 0 : i32
    %0 = arith.cmpi eq, %arg0, %c0_i32 : i32
    %1 = arith.extui %0 : i1 to i32
    %c0_i32_0 = arith.constant 0 : i32
    %2 = arith.cmpi ne, %1, %c0_i32_0 : i32
    scf.if %2 {
      %c0_56 = arith.constant 0 : index
      %c0_57 = arith.constant 0 : index
      %115 = vector.load %arg1[%c0_56, %c0_57] : memref<32x128xf32, #tpu.memory_space<vmem>>, vector<32x128xf32>
      %c0_58 = arith.constant 0 : index
      %c0_59 = arith.constant 0 : index
      %116 = vector.load %arg20[%c0_58, %c0_59] : memref<32x128xf32, #tpu.memory_space<vmem>>, vector<32x128xf32>
      tpu.vector_store %arg20[%c0_58, %c0_59], %115 {strides = array<i32>} : memref<32x128xf32, #tpu.memory_space<vmem>>, vector<32x128xf32>,
    } else {
    }
    %c0 = arith.constant 0 : index
    %c0_1 = arith.constant 0 : index
    %3 = vector.load %arg20[%c0, %c0_1] : memref<32x128xf32, #tpu.memory_space<vmem>>, vector<32x128xf32>
    %c0_2 = arith.constant 0 : index
    %c0_3 = arith.constant 0 : index
    %4 = vector.load %arg2[%c0_2, %c0_3] : memref<32x128xf32, #tpu.memory_space<vmem>>, vector<32x128xf32>
    %c0_4 = arith.constant 0 : index
    %c0_5 = arith.constant 0 : index
    %5 = vector.load %arg3[%c0_4, %c0_5] : memref<32x128xf32, #tpu.memory_space<vmem>>, vector<32x128xf32>
    %c0_6 = arith.constant 0 : index
    %c0_7 = arith.constant 0 : index
    %c0_8 = arith.constant 0 : index
    %6 = vector.load %arg7[%c0_6, %c0_7, %c0_8] : memref<1x128x640xbf16, #tpu.memory_space<vmem>>, vector<1x128x640xbf16>
    %7 = vector.shape_cast %6 : vector<1x128x640xbf16> to vector<128x640xbf16>
    %8 = arith.truncf %3 : vector<32x128xf32> to vector<32x128xbf16>
    %cst = arith.constant dense<0.000000e+00> : vector<32x640xf32>
    %9 = tpu.matmul %8, %7, %cst {dimension_numbers = #tpu.dot_dimension_numbers<[1], [0], [0], [1], [0, 0, 1, 1], [], []>} : vector<32x128xbf16>, vector<128x640xbf16>, vector<32x640xf32> -> vector<32x640xf32>
    %c0_9 = arith.constant 0 : index
    %c0_10 = arith.constant 0 : index
    %c0_11 = arith.constant 0 : index
    %10 = vector.load %arg8[%c0_9, %c0_10, %c0_11] : memref<1x1x640xf32, #tpu.memory_space<vmem>>, vector<1x1x640xf32>
    %11 = vector.shape_cast %10 : vector<1x1x640xf32> to vector<1x640xf32>
    %12 = vector.broadcast %11 : vector<1x640xf32> to vector<32x640xf32>
    %13 = arith.addf %9, %12 : vector<32x640xf32>
    %14 = vector.extract_strided_slice %13 {offsets = [0, 0], sizes = [32, 128], strides = [1, 1]} : vector<32x640xf32> to vector<32x128xf32>
    %15 = arith.mulf %14, %4 : vector<32x128xf32>
    %16 = vector.extract_strided_slice %13 {offsets = [0, 384], sizes = [32, 128], strides = [1, 1]} : vector<32x640xf32> to vector<32x128xf32>
    %17 = arith.mulf %16, %5 : vector<32x128xf32>
    %18 = arith.addf %15, %17 : vector<32x128xf32>
    %19 = vector.extract_strided_slice %13 {offsets = [0, 128], sizes = [32, 128], strides = [1, 1]} : vector<32x640xf32> to vector<32x128xf32>
    %20 = arith.mulf %19, %4 : vector<32x128xf32>
    %21 = vector.extract_strided_slice %13 {offsets = [0, 512], sizes = [32, 128], strides = [1, 1]} : vector<32x640xf32> to vector<32x128xf32>
    %22 = arith.mulf %21, %5 : vector<32x128xf32>
    %23 = arith.addf %20, %22 : vector<32x128xf32>
    %24 = vector.extract_strided_slice %13 {offsets = [0, 256], sizes = [32, 128], strides = [1, 1]} : vector<32x640xf32> to vector<32x128xf32>
    %c0_12 = arith.constant 0 : index
    %c0_13 = arith.constant 0 : index
    %25 = vector.load %arg5[%c0_12, %c0_13] : memref<256x128xbf16, #tpu.memory_space<vmem>>, vector<256x128xbf16>
    %26 = arith.truncf %23 : vector<32x128xf32> to vector<32x128xbf16>
    %27 = vector.shape_cast %26 : vector<32x128xbf16> to vector<2x1x16x128xbf16>
    %28 = vector.shape_cast %27 : vector<2x1x16x128xbf16> to vector<2x1x16x128xbf16>
    %29 = vector.broadcast %28 : vector<2x1x16x128xbf16> to vector<2x16x16x128xbf16>
    %30 = vector.shape_cast %29 : vector<2x16x16x128xbf16> to vector<2x256x128xbf16>
    %31 = vector.shape_cast %25 : vector<256x128xbf16> to vector<1x256x128xbf16>
    %32 = vector.broadcast %31 : vector<1x256x128xbf16> to vector<2x256x128xbf16>
    %33 = arith.mulf %30, %32 : vector<2x256x128xbf16>
    %34 = arith.truncf %18 : vector<32x128xf32> to vector<32x128xbf16>
    %35 = vector.shape_cast %34 : vector<32x128xbf16> to vector<2x16x128xbf16>
    "tpu.trace_start"() <{level = 10 : i32, message = "bqd,bcd->bqc"}> : () -> ()
    %cst_14 = arith.constant dense<0.000000e+00> : vector<2x16x256xf32>
    %36 = tpu.matmul %35, %33, %cst_14 {dimension_numbers = #tpu.dot_dimension_numbers<[2], [2], [1], [1], [0, 0, 0, 1, 1, 1], [0], [0]>} : vector<2x16x128xbf16>, vector<2x256x128xbf16>, vector<2x16x256xf32> -> vector<2x16x256xf32>
    "tpu.trace_stop"() : () -> ()
    %37 = vector.shape_cast %36 : vector<2x16x256xf32> to vector<32x256xf32>
    %cst_15 = arith.constant 0.353553385 : f32
    %38 = vector.broadcast %cst_15 : f32 to vector<32x256xf32>
    %39 = arith.mulf %37, %38 : vector<32x256xf32>
    %c0_16 = arith.constant 0 : index
    %c0_17 = arith.constant 0 : index
    %40 = vector.load %arg4[%c0_16, %c0_17] : memref<32x256xf32, #tpu.memory_space<vmem>>, vector<32x256xf32>
    %41 = arith.addf %39, %40 : vector<32x256xf32>
    %cst_18 = arith.constant dense<0xFF800000> : vector<32xf32>
    %42 = vector.multi_reduction <maximumf>, %41, %cst_18 [1] : vector<32x256xf32> to vector<32xf32>
    %43 = vector.shape_cast %42 : vector<32xf32> to vector<32x1xf32>
    %44 = vector.broadcast %43 : vector<32x1xf32> to vector<32x256xf32>
    %45 = arith.subf %41, %44 : vector<32x256xf32>
    %46 = math.exp %45 : vector<32x256xf32>
    %c0_19 = arith.constant 0 : index
    %c0_20 = arith.constant 0 : index
    %47 = vector.load %arg6[%c0_19, %c0_20] : memref<256x256xf32, #tpu.memory_space<vmem>>, vector<256x256xf32>
    %cst_21 = arith.constant dense<0.000000e+00> : vector<32x256xf32>
    %48 = tpu.matmul %46, %47, %cst_21 {dimension_numbers = #tpu.dot_dimension_numbers<[1], [0], [0], [1], [0, 0, 1, 1], [], []>} : vector<32x256xf32>, vector<256x256xf32>, vector<32x256xf32> -> vector<32x256xf32>
    %cst_22 = arith.constant 1.000000e-30 : f32
    %49 = vector.broadcast %cst_22 : f32 to vector<32x256xf32>
    %50 = arith.maximumf %48, %49 : vector<32x256xf32>
    %51 = tpu.reciprocal %50 {approx = true} : vector<32x256xf32> -> vector<32x256xf32>
    %52 = arith.mulf %46, %51 : vector<32x256xf32>
    %53 = arith.truncf %24 : vector<32x128xf32> to vector<32x128xbf16>
    %54 = vector.shape_cast %53 : vector<32x128xbf16> to vector<2x1x16x128xbf16>
    %55 = vector.shape_cast %54 : vector<2x1x16x128xbf16> to vector<2x1x16x128xbf16>
    %56 = vector.broadcast %55 : vector<2x1x16x128xbf16> to vector<2x16x16x128xbf16>
    %57 = vector.shape_cast %56 : vector<2x16x16x128xbf16> to vector<2x256x128xbf16>
    %58 = vector.shape_cast %25 : vector<256x128xbf16> to vector<1x256x128xbf16>
    %59 = vector.broadcast %58 : vector<1x256x128xbf16> to vector<2x256x128xbf16>
    %60 = arith.mulf %57, %59 : vector<2x256x128xbf16>
    %61 = vector.shape_cast %52 : vector<32x256xf32> to vector<2x16x256xf32>
    %62 = arith.truncf %61 : vector<2x16x256xf32> to vector<2x16x256xbf16>
    "tpu.trace_start"() <{level = 10 : i32, message = "bqc,bcd->bqd"}> : () -> ()
    %cst_23 = arith.constant dense<0.000000e+00> : vector<2x16x128xf32>
    %63 = tpu.matmul %62, %60, %cst_23 {dimension_numbers = #tpu.dot_dimension_numbers<[2], [1], [1], [2], [0, 0, 0, 1, 1, 2], [0], [0]>} : vector<2x16x256xbf16>, vector<2x256x128xbf16>, vector<2x16x128xf32> -> vector<2x16x128xf32>
    "tpu.trace_stop"() : () -> ()
    %64 = vector.shape_cast %63 : vector<2x16x128xf32> to vector<32x128xf32>
    %c0_24 = arith.constant 0 : index
    %c0_25 = arith.constant 0 : index
    %c0_26 = arith.constant 0 : index
    %65 = vector.load %arg9[%c0_24, %c0_25, %c0_26] : memref<1x128x128xbf16, #tpu.memory_space<vmem>>, vector<1x128x128xbf16>
    %66 = vector.shape_cast %65 : vector<1x128x128xbf16> to vector<128x128xbf16>
    %67 = arith.truncf %64 : vector<32x128xf32> to vector<32x128xbf16>
    %cst_27 = arith.constant dense<0.000000e+00> : vector<32x128xf32>
    %68 = tpu.matmul %67, %66, %cst_27 {dimension_numbers = #tpu.dot_dimension_numbers<[1], [0], [0], [1], [0, 0, 1, 1], [], []>} : vector<32x128xbf16>, vector<128x128xbf16>, vector<32x128xf32> -> vector<32x128xf32>
    %c0_28 = arith.constant 0 : index
    %c0_29 = arith.constant 0 : index
    %c0_30 = arith.constant 0 : index
    %69 = vector.load %arg10[%c0_28, %c0_29, %c0_30] : memref<1x1x128xf32, #tpu.memory_space<vmem>>, vector<1x1x128xf32>
    %70 = vector.shape_cast %69 : vector<1x1x128xf32> to vector<1x128xf32>
    %71 = vector.broadcast %70 : vector<1x128xf32> to vector<32x128xf32>
    %72 = arith.addf %68, %71 : vector<32x128xf32>
    %73 = arith.addf %3, %72 : vector<32x128xf32>
    %c0_31 = arith.constant 0 : index
    %c0_32 = arith.constant 0 : index
    %c0_33 = arith.constant 0 : index
    %74 = vector.load %arg11[%c0_31, %c0_32, %c0_33] : memref<1x128x384xbf16, #tpu.memory_space<vmem>>, vector<1x128x384xbf16>
    %75 = vector.shape_cast %74 : vector<1x128x384xbf16> to vector<128x384xbf16>
    %76 = arith.truncf %73 : vector<32x128xf32> to vector<32x128xbf16>
    %cst_34 = arith.constant dense<0.000000e+00> : vector<32x384xf32>
    %77 = tpu.matmul %76, %75, %cst_34 {dimension_numbers = #tpu.dot_dimension_numbers<[1], [0], [0], [1], [0, 0, 1, 1], [], []>} : vector<32x128xbf16>, vector<128x384xbf16>, vector<32x384xf32> -> vector<32x384xf32>
    %c0_35 = arith.constant 0 : index
    %c0_36 = arith.constant 0 : index
    %c0_37 = arith.constant 0 : index
    %78 = vector.load %arg12[%c0_35, %c0_36, %c0_37] : memref<1x1x384xf32, #tpu.memory_space<vmem>>, vector<1x1x384xf32>
    %79 = vector.shape_cast %78 : vector<1x1x384xf32> to vector<1x384xf32>
    %80 = vector.broadcast %79 : vector<1x384xf32> to vector<32x384xf32>
    %81 = arith.addf %77, %80 : vector<32x384xf32>
    %cst_38 = arith.constant 5.000000e-01 : f32
    %82 = vector.broadcast %cst_38 : f32 to vector<32x384xf32>
    %83 = arith.mulf %82, %81 : vector<32x384xf32>
    %cst_39 = arith.constant 0.707106769 : f32
    %84 = vector.broadcast %cst_39 : f32 to vector<32x384xf32>
    %85 = arith.mulf %81, %84 : vector<32x384xf32>
    %86 = math.erf %85 : vector<32x384xf32>
    %cst_40 = arith.constant 1.000000e+00 : f32
    %87 = vector.broadcast %cst_40 : f32 to vector<32x384xf32>
    %88 = arith.addf %87, %86 : vector<32x384xf32>
    %89 = arith.mulf %83, %88 : vector<32x384xf32>
    %c0_41 = arith.constant 0 : index
    %c0_42 = arith.constant 0 : index
    %c0_43 = arith.constant 0 : index
    %90 = vector.load %arg13[%c0_41, %c0_42, %c0_43] : memref<1x384x128xbf16, #tpu.memory_space<vmem>>, vector<1x384x128xbf16>
    %91 = vector.shape_cast %90 : vector<1x384x128xbf16> to vector<384x128xbf16>
    %92 = arith.truncf %89 : vector<32x384xf32> to vector<32x384xbf16>
    %cst_44 = arith.constant dense<0.000000e+00> : vector<32x128xf32>
    %93 = tpu.matmul %92, %91, %cst_44 {dimension_numbers = #tpu.dot_dimension_numbers<[1], [0], [0], [1], [0, 0, 1, 1], [], []>} : vector<32x384xbf16>, vector<384x128xbf16>, vector<32x128xf32> -> vector<32x128xf32>
    %94 = arith.addf %73, %93 : vector<32x128xf32>
    %c0_45 = arith.constant 0 : index
    %c0_46 = arith.constant 0 : index
    %c0_47 = arith.constant 0 : index
    %95 = vector.load %arg14[%c0_45, %c0_46, %c0_47] : memref<1x1x128xf32, #tpu.memory_space<vmem>>, vector<1x1x128xf32>
    %96 = vector.shape_cast %95 : vector<1x1x128xf32> to vector<1x128xf32>
    %97 = vector.broadcast %96 : vector<1x128xf32> to vector<32x128xf32>
    %98 = arith.addf %94, %97 : vector<32x128xf32>
    %99 = arith.mulf %98, %98 : vector<32x128xf32>
    %cst_48 = arith.constant dense<0.000000e+00> : vector<32xf32>
    %100 = vector.multi_reduction <add>, %99, %cst_48 [1] : vector<32x128xf32> to vector<32xf32>
    %101 = vector.shape_cast %100 : vector<32xf32> to vector<32x1xf32>
    %cst_49 = arith.constant 0.010416667 : f32
    %102 = vector.broadcast %cst_49 : f32 to vector<32x1xf32>
    %103 = arith.mulf %101, %102 : vector<32x1xf32>
    %c0_50 = arith.constant 0 : index
    %c0_51 = arith.constant 0 : index
    %c0_52 = arith.constant 0 : index
    %104 = vector.load %arg15[%c0_50, %c0_51, %c0_52] : memref<1x1x1xf32, #tpu.memory_space<vmem>>, vector<1x1x1xf32>
    %105 = vector.shape_cast %104 : vector<1x1x1xf32> to vector<1x1xf32>
    %106 = vector.broadcast %105 : vector<1x1xf32> to vector<32x1xf32>
    %107 = arith.addf %103, %106 : vector<32x1xf32>
    %108 = math.rsqrt %107 : vector<32x1xf32>
    %109 = vector.broadcast %108 : vector<32x1xf32> to vector<32x128xf32>
    %110 = arith.mulf %98, %109 : vector<32x128xf32>
    %c0_53 = arith.constant 0 : index
    %c0_54 = arith.constant 0 : index
    %111 = vector.load %arg20[%c0_53, %c0_54] : memref<32x128xf32, #tpu.memory_space<vmem>>, vector<32x128xf32>
    tpu.vector_store %arg20[%c0_53, %c0_54], %110 {strides = array<i32>} : memref<32x128xf32, #tpu.memory_space<vmem>>, vector<32x128xf32>,
    %c1_i32 = arith.constant 1 : i32
    %112 = arith.cmpi eq, %arg0, %c1_i32 : i32
    %113 = arith.extui %112 : i1 to i32
    %c0_i32_55 = arith.constant 0 : i32
    %114 = arith.cmpi ne, %113, %c0_i32_55 : i32
    scf.if %114 {
      %115 = arith.mulf %110, %110 : vector<32x128xf32>
      %cst_56 = arith.constant dense<0.000000e+00> : vector<32xf32>
      %116 = vector.multi_reduction <add>, %115, %cst_56 [1] : vector<32x128xf32> to vector<32xf32>
      %117 = vector.shape_cast %116 : vector<32xf32> to vector<32x1xf32>
      %cst_57 = arith.constant 0.010416667 : f32
      %118 = vector.broadcast %cst_57 : f32 to vector<32x1xf32>
      %119 = arith.mulf %117, %118 : vector<32x1xf32>
      %c0_58 = arith.constant 0 : index
      %c0_59 = arith.constant 0 : index
      %120 = vector.load %arg18[%c0_58, %c0_59] : memref<1x1xf32, #tpu.memory_space<vmem>>, vector<1x1xf32>
      %121 = vector.broadcast %120 : vector<1x1xf32> to vector<32x1xf32>
      %122 = arith.addf %119, %121 : vector<32x1xf32>
      %123 = math.rsqrt %122 : vector<32x1xf32>
      %124 = vector.broadcast %123 : vector<32x1xf32> to vector<32x128xf32>
      %125 = arith.mulf %110, %124 : vector<32x128xf32>
      %c0_60 = arith.constant 0 : index
      %c0_61 = arith.constant 0 : index
      %126 = vector.load %arg16[%c0_60, %c0_61] : memref<128x128xbf16, #tpu.memory_space<vmem>>, vector<128x128xbf16>
      %127 = arith.truncf %125 : vector<32x128xf32> to vector<32x128xbf16>
      %cst_62 = arith.constant dense<0.000000e+00> : vector<32x128xf32>
      %128 = tpu.matmul %127, %126, %cst_62 {dimension_numbers = #tpu.dot_dimension_numbers<[1], [0], [0], [1], [0, 0, 1, 1], [], []>} : vector<32x128xbf16>, vector<128x128xbf16>, vector<32x128xf32> -> vector<32x128xf32>
      %c0_63 = arith.constant 0 : index
      %c0_64 = arith.constant 0 : index
      %129 = vector.load %arg17[%c0_63, %c0_64] : memref<1x128xf32, #tpu.memory_space<vmem>>, vector<1x128xf32>
      %130 = vector.broadcast %129 : vector<1x128xf32> to vector<32x128xf32>
      %131 = arith.addf %128, %130 : vector<32x128xf32>
      %c0_65 = arith.constant 0 : index
      %c0_66 = arith.constant 0 : index
      %132 = vector.load %arg19[%c0_65, %c0_66] : memref<32x128xf32, #tpu.memory_space<vmem>>, vector<32x128xf32>
      tpu.vector_store %arg19[%c0_65, %c0_66], %131 {strides = array<i32>} : memref<32x128xf32, #tpu.memory_space<vmem>>, vector<32x128xf32>,
    } else {
    }
    return
  }
  func.func @transform_0(%arg0: i32) -> (i32, i32) {
    %c0_i32 = arith.constant 0 : i32
    %c0_i32_0 = arith.constant 0 : i32
    %c0_i32_1 = arith.constant 0 : i32
    return %c0_i32, %c0_i32_0 : i32, i32
  }
  func.func @transform_1(%arg0: i32) -> (i32, i32) {
    %c0_i32 = arith.constant 0 : i32
    %c0_i32_0 = arith.constant 0 : i32
    %c0_i32_1 = arith.constant 0 : i32
    return %c0_i32, %c0_i32_0 : i32, i32
  }
  func.func @transform_2(%arg0: i32) -> (i32, i32) {
    %c0_i32 = arith.constant 0 : i32
    %c0_i32_0 = arith.constant 0 : i32
    %c0_i32_1 = arith.constant 0 : i32
    return %c0_i32, %c0_i32_0 : i32, i32
  }
  func.func @transform_3(%arg0: i32) -> (i32, i32) {
    %c0_i32 = arith.constant 0 : i32
    %c0_i32_0 = arith.constant 0 : i32
    %c0_i32_1 = arith.constant 0 : i32
    return %c0_i32, %c0_i32_0 : i32, i32
  }
  func.func @transform_4(%arg0: i32) -> (i32, i32) {
    %c0_i32 = arith.constant 0 : i32
    %c0_i32_0 = arith.constant 0 : i32
    %c0_i32_1 = arith.constant 0 : i32
    return %c0_i32, %c0_i32_0 : i32, i32
  }
  func.func @transform_5(%arg0: i32) -> (i32, i32) {
    %c0_i32 = arith.constant 0 : i32
    %c0_i32_0 = arith.constant 0 : i32
    %c0_i32_1 = arith.constant 0 : i32
    return %c0_i32, %c0_i32_0 : i32, i32
  }
  func.func @transform_6(%arg0: i32) -> (i32, i32, i32) {
    %c0_i32 = arith.constant 0 : i32
    %c0_i32_0 = arith.constant 0 : i32
    %c0_i32_1 = arith.constant 0 : i32
    return %arg0, %c0_i32, %c0_i32_0 : i32, i32, i32
  }
  func.func @transform_7(%arg0: i32) -> (i32, i32, i32) {
    %c0_i32 = arith.constant 0 : i32
    %c0_i32_0 = arith.constant 0 : i32
    %c0_i32_1 = arith.constant 0 : i32
    return %arg0, %c0_i32, %c0_i32_0 : i32, i32, i32
  }
  func.func @transform_8(%arg0: i32) -> (i32, i32, i32) {
    %c0_i32 = arith.constant 0 : i32
    %c0_i32_0 = arith.constant 0 : i32
    %c0_i32_1 = arith.constant 0 : i32
    return %arg0, %c0_i32, %c0_i32_0 : i32, i32, i32
  }
  func.func @transform_9(%arg0: i32) -> (i32, i32, i32) {
    %c0_i32 = arith.constant 0 : i32
    %c0_i32_0 = arith.constant 0 : i32
    %c0_i32_1 = arith.constant 0 : i32
    return %arg0, %c0_i32, %c0_i32_0 : i32, i32, i32
  }
  func.func @transform_10(%arg0: i32) -> (i32, i32, i32) {
    %c0_i32 = arith.constant 0 : i32
    %c0_i32_0 = arith.constant 0 : i32
    %c0_i32_1 = arith.constant 0 : i32
    return %arg0, %c0_i32, %c0_i32_0 : i32, i32, i32
  }
  func.func @transform_11(%arg0: i32) -> (i32, i32, i32) {
    %c0_i32 = arith.constant 0 : i32
    %c0_i32_0 = arith.constant 0 : i32
    %c0_i32_1 = arith.constant 0 : i32
    return %arg0, %c0_i32, %c0_i32_0 : i32, i32, i32
  }
  func.func @transform_12(%arg0: i32) -> (i32, i32, i32) {
    %c0_i32 = arith.constant 0 : i32
    %c0_i32_0 = arith.constant 0 : i32
    %c0_i32_1 = arith.constant 0 : i32
    return %arg0, %c0_i32, %c0_i32_0 : i32, i32, i32
  }
  func.func @transform_13(%arg0: i32) -> (i32, i32, i32) {
    %c0_i32 = arith.constant 0 : i32
    %c0_i32_0 = arith.constant 0 : i32
    %c0_i32_1 = arith.constant 0 : i32
    return %arg0, %c0_i32, %c0_i32_0 : i32, i32, i32
  }
  func.func @transform_14(%arg0: i32) -> (i32, i32, i32) {
    %c0_i32 = arith.constant 0 : i32
    %c0_i32_0 = arith.constant 0 : i32
    %c0_i32_1 = arith.constant 0 : i32
    return %arg0, %c0_i32, %c0_i32_0 : i32, i32, i32
  }
  func.func @transform_15(%arg0: i32) -> (i32, i32) {
    %c0_i32 = arith.constant 0 : i32
    %c0_i32_0 = arith.constant 0 : i32
    %c0_i32_1 = arith.constant 0 : i32
    return %c0_i32, %c0_i32_0 : i32, i32
  }
  func.func @transform_16(%arg0: i32) -> (i32, i32) {
    %c0_i32 = arith.constant 0 : i32
    %c0_i32_0 = arith.constant 0 : i32
    %c0_i32_1 = arith.constant 0 : i32
    return %c0_i32, %c0_i32_0 : i32, i32
  }
  func.func @transform_17(%arg0: i32) -> (i32, i32) {
    %c0_i32 = arith.constant 0 : i32
    %c0_i32_0 = arith.constant 0 : i32
    %c0_i32_1 = arith.constant 0 : i32
    return %c0_i32, %c0_i32_0 : i32, i32
  }
  func.func @transform_18(%arg0: i32) -> (i32, i32) {
    %c0_i32 = arith.constant 0 : i32
    %c0_i32_0 = arith.constant 0 : i32
    %c0_i32_1 = arith.constant 0 : i32
    return %c0_i32, %c0_i32_0 : i32, i32
  }
}

</mosaic_0001>

<bundles_post_ra>
// kernel: transformer_forward.1
= control target key start
LH: loop header
LB: loop body
LE: loop exit
PB: predicated region body
PF: predicated region fallthrough
CT: control target
= control target key end

     0   :  { %s4633_s0 = inlined_call_operand.vmem [shape: f32[32,128], index: 0, kind: input, shape index: {}]   ;;  %s4634_s1 = inlined_call_operand.vmem [shape: f32[32,128], index: 1, kind: input, shape index: {}]   ;;  %s4635_s2 = inlined_call_operand.vmem [shape: f32[32,128], index: 2, kind: input, shape index: {}]   ;;  %s4636_s3 = inlined_call_operand.vmem [shape: f32[32,256], index: 3, kind: input, shape index: {}]   ;;  %s4637_s4 = inlined_call_operand.vmem [shape: bf16[256,128], index: 4, kind: input, shape index: {}]   ;;  %s4638_s5 = inlined_call_operand.vmem [shape: f32[256,256], index: 5, kind: input, shape index: {}]   ;;  %s4639_s6 = inlined_call_operand.vmem [shape: bf16[2,128,640], index: 6, kind: input, shape index: {}]   ;;  %s4640_s7 = inlined_call_operand.vmem [shape: f32[2,1,640], index: 7, kind: input, shape index: {}]   ;;  %s4641_s8 = inlined_call_operand.vmem [shape: bf16[2,128,128], index: 8, kind: input, shape index: {}]   ;;  %s4642_s9 = inlined_call_operand.vmem [shape: f32[2,1,128], index: 9, kind: input, shape index: {}]   ;;  %s4643_s10 = inlined_call_operand.vmem [shape: bf16[2,128,384], index: 10, kind: input, shape index: {}]   ;;  %s4644_s11 = inlined_call_operand.vmem [shape: f32[2,1,384], index: 11, kind: input, shape index: {}]   ;;  %s4645_s12 = inlined_call_operand.vmem [shape: bf16[2,384,128], index: 12, kind: input, shape index: {}]   ;;  %s4646_s13 = inlined_call_operand.vmem [shape: f32[2,1,128], index: 13, kind: input, shape index: {}]   ;;  %s4647_s14 = inlined_call_operand.vmem [shape: f32[2,1,1], index: 14, kind: input, shape index: {}]   ;;  %s4648_s15 = inlined_call_operand.vmem [shape: bf16[128,128], index: 15, kind: input, shape index: {}]   ;;  %s4649_s16 = inlined_call_operand.vmem [shape: f32[1,128], index: 16, kind: input, shape index: {}]   ;;  %s4650_s17 = inlined_call_operand.<no memory space> [shape: f32[1,1], index: 17, kind: input, shape index: {}]   ;;  %s4651_s18 = inlined_call_operand.hbm [shape: f32[32,128], index: 18, kind: output, shape index: {}]  }
   0x1   :  { %4663 = sst [smem:[#allocation8_spill]] %s4633_s0  ;;  %v23_v0 = vstv %s4650_s17 }
   0x2   :  { %4664 = sst [smem:[#allocation9_spill]] %s4634_s1  ;;  %24 = vst [vmem:[#allocation3] sm:$0x1] %v23_v0 }
   0x3   :  { %4665 = sst [smem:[#allocation10_spill]] %s4635_s2 }
   0x4   :  { %4666 = sst [smem:[#allocation11_spill]] %s4636_s3 }
   0x5   :  { %4667 = sst [smem:[#allocation12_spill]] %s4641_s8 }
   0x6   :  { %4668 = sst [smem:[#allocation13_spill]] %s4648_s15 }
   0x7   :  { %4669 = sst [smem:[#allocation14_spill]] %s4649_s16 }
   0x8   :  { %4670 = sst [smem:[#allocation15_spill]] %s4651_s18 }
   0x9   :  { %25 = vsyncpa [#allocation5], 0  ;;  %s3738_s29 = smov 0  }
   0xa LB: > { %4671 = sst [smem:[#allocation7_spill]] %s3633_s29  ;;  %s3744_s30 = sadd.s32 4294967295, %s3633_s29   ;;  %s3633_s29 = sphi %s3738_s29, %s31_s29  }
   0xb   : > { %p2956_p0 = scmp.ge.s32.totalorder %s3633_s29, 1  ;;  %p582_p1 = scmp.lt.s32.totalorder %s3633_s29, 3 }
   0xd   : > { %p583_p2 = pnand %p2956_p0, %p582_p1 }
   0xe   : > { %p663_p3 = scmp.lt.s32.totalorder (!%p583_p2), %s3744_s30, 1  ;;  %s4672_s8 = sld [smem:[#allocation12_spill]] (!%p583_p2) }
   0xf   : > { %586 = sbr.rel (%p583_p2) target bundleno = 2641 (0xa51), region = 92  ;;  %p2962_p4 = scmp.ne.s32.totalorder (!%p583_p2), %s3744_s30, 0 }
  0x14   : > { %s3750_s17 = scalar_select %p663_p3, %s3744_s30, 1 }
  0x15   : > { %s4673_s21 = sld [smem:[#allocation8_spill]] (!%p2962_p4) }
  0x16   : > { %s3352_s0 = smul.u32 320, %s3750_s17  ;;  %s3093_s19 = sshll.u32 %s3750_s17, 6 }
  0x17   : > { %s3353_s1 = smul.u32 5, %s3750_s17  ;;  %s3758_s22 = scalar_lea.vmem %s4672_s8, %s3093_s19 }
  0x18   : > { %s3763_s24 = scalar_lea.vmem %s4639_s6, %s3352_s0  ;;  %s3354_s16 = smul.u32 192, %s3750_s17 }
  0x19   : > { %s3772_s18 = scalar_lea.vmem %s4640_s7, %s3353_s1  ;;  %s3355_s15 = smul.u32 3, %s3750_s17 }
  0x1a   : > { %s3783_s0 = scalar_lea.vmem %s4643_s10, %s3354_s16  ;;  %s3788_s25 = scalar_lea.vmem %s4645_s12, %s3354_s16 }
  0x1b   : > { %s3793_s1 = scalar_lea.vmem %s4644_s11, %s3355_s15  ;;  %s699_s3 = scalar_lea.vmem %s4647_s14, %s3750_s17 }
  0x1c   : > { %704 = sbr.rel (%p2962_p4) target bundleno = 36 (0x24), region = 96 }
  0x21   : > { %v705_v1 = vld [vmem:[%s4673_s21] sm:$0xff]  ;;  %v706_v2 = vld [vmem:[%s4673_s21 + $0x8] sm:$0xff]  ;;  %v707_v3 = vld [vmem:[%s4673_s21 + $0x10] sm:$0xff] }
  0x22   : > { %709 = vst [vmem:[#allocation2 + $0x10] sm:$0xff] %v705_v1  ;;  %710 = vst [vmem:[#allocation2] sm:$0xff] %v706_v2  ;;  %v708_v4 = vld [vmem:[%s4673_s21 + $0x18] sm:$0xff] }
  0x23   : > { %711 = vst [vmem:[#allocation2 + $0x18] sm:$0xff] %v707_v3  ;;  %712 = vst [vmem:[#allocation2 + $0x8] sm:$0xff] %v708_v4 }
  0x24 PF: > { %v3377_v5 = vld [vmem:[%s3763_s24 + $0x11c] ss:$20 sps:$4 sm:$0xff]   ;;  %v3379_v6 = vld [vmem:[%s3763_s24 + $0x124] ss:$20 sps:$4 sm:$0xff]   ;;  %v4660_v7 = vmov 0   ;;  %v777_v52 = vlaneseq  ;;  %s4674_s19 = sld [smem:[#allocation9_spill]] }
  0x25   : > { %1042 = vmatprep.mubr.bf16.mxu0 %v4660_v7  ;;  %1095 = vmatprep.mubr.bf16.mxu1 %v4660_v7  ;;  %v3381_v8 = vld [vmem:[%s3763_s24 + $0x118] ss:$20 sps:$4 sm:$0xff]   ;;  %v3382_v9 = vld [vmem:[%s3763_s24 + $0x120] ss:$20 sps:$4 sm:$0xff]   ;;  %v3385_v11 = vld [vmem:[%s3763_s24 + $0xfc] ss:$20 sps:$4 sm:$0xff]  }
  0x26   : > { %1010 = vmatprep.subr.bf16.mxu0 %v3377_v5  ;;  %3375 = vset.pattern.permute.xlu0 %v4660_v7  ;;  %v3383_v10 = vld [vmem:[%s3763_s24 + $0xf4] ss:$20 sps:$4 sm:$0xff]   ;;  %v3387_v12 = vld [vmem:[%s3763_s24 + $0xf0] ss:$20 sps:$4 sm:$0xff]   ;;  %v3388_v13 = vld [vmem:[%s3763_s24 + $0xf8] ss:$20 sps:$4 sm:$0xff]  }
  0x27   : > { %1063 = vmatprep.subr.bf16.mxu1 %v3379_v6  ;;  %3376 = vset.pattern.permute.xlu1 %v4660_v7  ;;  %v3389_v14 = vld [vmem:[%s3763_s24 + $0xcc] ss:$20 sps:$4 sm:$0xff]   ;;  %v3391_v15 = vld [vmem:[%s3763_s24 + $0xd4] ss:$20 sps:$4 sm:$0xff]   ;;  %v3394_v17 = vld [vmem:[%s3763_s24 + $0xd0] ss:$20 sps:$4 sm:$0xff]  }
  0x28   : > { %1011 = vmatpush1.bf16.msra.mxu0 %v3381_v8  ;;  %1064 = vmatpush1.bf16.msra.mxu1 %v3382_v9  ;;  %v3393_v16 = vld [vmem:[%s3763_s24 + $0xc8] ss:$20 sps:$4 sm:$0xff]   ;;  %v3395_v18 = vld [vmem:[%s3763_s24 + $0xa4] ss:$20 sps:$4 sm:$0xff]   ;;  %v3397_v19 = vld [vmem:[%s3763_s24 + $0xac] ss:$20 sps:$4 sm:$0xff]  }
  0x29   : > { %1012 = vmatprep.subr.bf16.mxu0 %v3383_v10  ;;  %1065 = vmatprep.subr.bf16.mxu1 %v3385_v11  ;;  %v3399_v20 = vld [vmem:[%s3763_s24 + $0xa0] ss:$20 sps:$4 sm:$0xff]   ;;  %v3400_v21 = vld [vmem:[%s3763_s24 + $0xa8] ss:$20 sps:$4 sm:$0xff]   ;;  %v3403_v23 = vld [vmem:[%s3763_s24 + $0x84] ss:$20 sps:$4 sm:$0xff]  }
  0x2a   : > { %v3401_v22 = vld [vmem:[%s3763_s24 + $0x7c] ss:$20 sps:$4 sm:$0xff]   ;;  %v3405_v24 = vld [vmem:[%s3763_s24 + $0x78] ss:$20 sps:$4 sm:$0xff]   ;;  %v3406_v25 = vld [vmem:[%s3763_s24 + $0x80] ss:$20 sps:$4 sm:$0xff]  }
  0x2b   : > { %v3407_v26 = vld [vmem:[%s3763_s24 + $0x54] ss:$20 sps:$4 sm:$0xff]   ;;  %v3409_v27 = vld [vmem:[%s3763_s24 + $0x5c] ss:$20 sps:$4 sm:$0xff]   ;;  %v3412_v29 = vld [vmem:[%s3763_s24 + $0x58] ss:$20 sps:$4 sm:$0xff]  }
  0x2c   : > { %1013 = vmatpush1.bf16.msra.mxu0 %v3387_v12  ;;  %1066 = vmatpush1.bf16.msra.mxu1 %v3388_v13  ;;  %v3411_v28 = vld [vmem:[%s3763_s24 + $0x50] ss:$20 sps:$4 sm:$0xff]   ;;  %v3413_v30 = vld [vmem:[%s3763_s24 + $0x2c] ss:$20 sps:$4 sm:$0xff]   ;;  %v3415_v31 = vld [vmem:[%s3763_s24 + $0x34] ss:$20 sps:$4 sm:$0xff]  }
  0x2d   : > { %1014 = vmatprep.subr.bf16.mxu0 %v3389_v14  ;;  %1067 = vmatprep.subr.bf16.mxu1 %v3391_v15  ;;  %v3417_v32 = vld [vmem:[%s3763_s24 + $0x28] ss:$20 sps:$4 sm:$0xff]   ;;  %v3418_v33 = vld [vmem:[%s3763_s24 + $0x30] ss:$20 sps:$4 sm:$0xff]   ;;  %v3421_v35 = vld [vmem:[%s3763_s24 + $0xc] ss:$20 sps:$4 sm:$0xff]  }
  0x2e   : > { %v3419_v34 = vld [vmem:[%s3763_s24 + $0x4] ss:$20 sps:$4 sm:$0xff]   ;;  %v3423_v36 = vld [vmem:[%s3763_s24] ss:$20 sps:$4 sm:$0xff]   ;;  %v3424_v37 = vld [vmem:[%s3763_s24 + $0x8] ss:$20 sps:$4 sm:$0xff]  }
  0x2f   : > { %v713_v38 = vld [vmem:[#allocation2 + $0x10] sm:$0xff]  ;;  %v714_v39 = vld [vmem:[#allocation2] sm:$0xff]  ;;  %v3425_v40 = vld [vmem:[%s3763_s24 + $0x128] ss:$20 sps:$4 sm:$0xff]   ;;  %v3858_v53 = vshrl.u32 %v777_v52, 7  ;;  %s4675_s28 = sld [smem:[#allocation10_spill]] }
  0x30   : > { %1015 = vmatpush1.bf16.msra.mxu0 %v3393_v16  ;;  %1068 = vmatpush1.bf16.msra.mxu1 %v3394_v17  ;;  %v773_v41 = vpack.c.bf16 %v714_v39, %v713_v38  ;;  %v3426_v42 = vld [vmem:[%s3763_s24 + $0x100] ss:$20 sps:$4 sm:$0xff]   ;;  %v715_v43 = vld [vmem:[#allocation2 + $0x18] sm:$0xff]  ;;  %v716_v44 = vld [vmem:[#allocation2 + $0x8] sm:$0xff]  ;;  %s4676_s26 = sld [smem:[#allocation11_spill]]  ;;  %p3078_p5 = scmp.ne.s32.totalorder %s3744_s30, 1 }
  0x31   : > { %1016 = vmatprep.subr.bf16.mxu0 %v3395_v18  ;;  %1069 = vmatprep.subr.bf16.mxu1 %v3397_v19  ;;  %v3427_v45 = vld [vmem:[%s3763_s24 + $0xd8] ss:$20 sps:$4 sm:$0xff]   ;;  %v3428_v46 = vld [vmem:[%s3763_s24 + $0xb0] ss:$20 sps:$4 sm:$0xff]   ;;  %v774_v47 = vpack.c.bf16 %v716_v44, %v715_v43  ;;  %v3429_v48 = vld [vmem:[%s3763_s24 + $0x88] ss:$20 sps:$4 sm:$0xff]  }
  0x32   : > { %v3430_v49 = vld [vmem:[%s3763_s24 + $0x60] ss:$20 sps:$4 sm:$0xff]   ;;  %v3431_v50 = vld [vmem:[%s3763_s24 + $0x38] ss:$20 sps:$4 sm:$0xff]   ;;  %v3432_v51 = vld [vmem:[%s3763_s24 + $0x10] ss:$20 sps:$4 sm:$0xff]   ;;  %s4683_s24 = scalar_lea.vmem %s4642_s9, %s3750_s17 }
  0x33   : > { %v4658_v54 = vsub.s32 2, %v3858_v53  ;;  %v4659_v55 = vsub.s32 0, %v3858_v53  ;;  %v791_v56 = vsub.s32 3, %v3858_v53  ;;  %v3864_v57 = vld [vmem:[%s3772_s18] sm:$0x1f]  ;;  %v3890_v13 = vld [vmem:[%s4674_s19 + $0x8] sm:$0xff] }
  0x34   : > { %1017 = vmatpush1.bf16.msra.mxu0 %v3399_v20  ;;  %1070 = vmatpush1.bf16.msra.mxu1 %v3400_v21  ;;  %v3878_v6 = vld [vmem:[%s4674_s19] sm:$0xff]  ;;  %v3904_v21 = vld [vmem:[%s4637_s4 + $0x38] sm:$0xff]   ;;  %v3963_v52 = vld [vmem:[%s4637_s4 + $0x28] sm:$0xff]   ;;  %s4688_s20 = sld [smem:[#allocation13_spill]] (!%p3078_p5) }
  0x35   : > { %1018 = vmatprep.subr.bf16.mxu0 %v3401_v22  ;;  %1071 = vmatprep.subr.bf16.mxu1 %v3403_v23  ;;  %v788_v58 = vrot.slane %v3864_v57, %v4658_v54  ;;  %v780_v59 = vrot.slane %v3864_v57, %v4659_v55  ;;  %v792_v62 = vrot.slane %v3864_v57, %v791_v56  ;;  %v3883_v8 = vld [vmem:[%s4675_s28] sm:$0xff]  ;;  %v3897_v15 = vld [vmem:[%s4675_s28 + $0x8] sm:$0xff]  ;;  %v3909_v22 = vld [vmem:[%s4637_s4 + $0x70] sm:$0xff]   ;;  %s4689_s16 = sld [smem:[#allocation14_spill]] (!%p3078_p5) }
  0x38   : > { %1019 = vmatpush1.bf16.msra.mxu0 %v3405_v24  ;;  %1072 = vmatpush1.bf16.msra.mxu1 %v3406_v25 }
  0x39   : > { %1020 = vmatprep.subr.bf16.mxu0 %v3407_v26  ;;  %1073 = vmatprep.subr.bf16.mxu1 %v3409_v27  ;;  %v3916_v26 = vld [vmem:[%s4674_s19 + $0x10] sm:$0xff] }
  0x3c   : > { %1021 = vmatpush1.bf16.msra.mxu0 %v3411_v28  ;;  %1074 = vmatpush1.bf16.msra.mxu1 %v3412_v29  ;;  %v3923_v28 = vld [vmem:[%s4675_s28 + $0x10] sm:$0xff] }
  0x3d   : > { %1022 = vmatprep.subr.bf16.mxu0 %v3413_v30  ;;  %1075 = vmatprep.subr.bf16.mxu1 %v3415_v31 }
  0x40   : > { %1023 = vmatpush1.bf16.msra.mxu0 %v3417_v32  ;;  %1076 = vmatpush1.bf16.msra.mxu1 %v3418_v33 }
  0x41   : > { %1024 = vmatprep.subr.bf16.mxu0 %v3419_v34  ;;  %1077 = vmatprep.subr.bf16.mxu1 %v3421_v35 }
  0x44   : > { %1025 = vmatpush1.bf16.msra.mxu0 %v3423_v36  ;;  %1078 = vmatpush1.bf16.msra.mxu1 %v3424_v37 }
  0x45   : > { %3252 = vmatprep.subr.bf16.mxu0 %v3425_v40 }
  0x47   : > { %1043 = vmatmul.mubr.bf16.vlgmr.msra.gmra.mxu0 %v773_v41  ;;  %1096 = vmatmul.mubr.bf16.vlgmr.msra.gmra.mxu1 %v773_v41 }
  0x48   : > { %3253 = vmatpush3.bf16.msra.mxu0 %v3425_v40  ;;  %1052 = vmatprep.mubr.bf16.mxu0 %v4660_v7  ;;  %v3934_v40 = vld [vmem:[%s4674_s19 + $0x18] sm:$0xff] }
  0x49   : > { %3254 = vmatprep.subr.bf16.mxu0 %v3426_v42  ;;  %1105 = vmatprep.mubr.bf16.mxu1 %v4660_v7 }
  0x4c   : > { %3255 = vmatpush3.bf16.msra.mxu0 %v3426_v42 }
  0x4d   : > { %3256 = vmatprep.subr.bf16.mxu0 %v3427_v45 }
  0x4f   : > { %1053 = vmatmul.mubr.bf16.gmra.mxu0 %v774_v47  ;;  %1106 = vmatmul.mubr.bf16.gmra.mxu1 %v774_v47 }
  0x50   : > { %3257 = vmatpush3.bf16.msra.mxu0 %v3427_v45  ;;  %3268 = vmatprep.mubr.bf16.mxu0 %v773_v41 }
  0x51   : > { %3258 = vmatprep.subr.bf16.mxu0 %v3428_v46 }
  0x54   : > { %3259 = vmatpush3.bf16.msra.mxu0 %v3428_v46  ;;  %v724_v46 = vld [vmem:[%s4675_s28 + $0x18] sm:$0xff] }
  0x55   : > { %3260 = vmatprep.subr.bf16.mxu0 %v3429_v48 }
  0x58   : > { %3261 = vmatpush3.bf16.msra.mxu0 %v3429_v48 }
  0x59   : > { %3262 = vmatprep.subr.bf16.mxu0 %v3430_v49 }
  0x5c   : > { %3263 = vmatpush3.bf16.msra.mxu0 %v3430_v49 }
  0x5d   : > { %3264 = vmatprep.subr.bf16.mxu0 %v3431_v50 }
  0x60   : > { %3265 = vmatpush3.bf16.msra.mxu0 %v3431_v50  ;;  %v3953_v50 = vld [vmem:[%s4637_s4 + $0x30] sm:$0xff]  }
  0x61   : > { %3266 = vmatprep.subr.bf16.mxu0 %v3432_v51 }
  0x64   : > { %3267 = vmatpush3.bf16.msra.mxu0 %v3432_v51  ;;  %v3958_v51 = vld [vmem:[%s4637_s4 + $0x68] sm:$0xff]  }
  0x67   : > { %3269 = vmatmul.mubr.bf16.vlgmr.msra.gmra.mxu0 %v774_v47  ;;  %v3946_v47 = vld [vmem:[%s4637_s4 + $0x78] sm:$0xff]  }
 0x107   : > { %v1044_v60 = vpop.f32.mrf.mxu0  ;;  %v1097_v61 = vpop.f32.mrf.mxu1 }
 0x108   : > { %v1098_v1 = vadd.f32 %v1097_v61, %v788_v58  ;;  %v1045_v2 = vadd.f32 %v1044_v60, %v780_v59  ;;  %v3978_v60 = vld [vmem:[%s4637_s4 + $0x58] sm:$0xff]  }
 0x109   : > { %v3873_v63 = vpop.f32.mrf.mxu0  ;;  %v1099_v0 = vpop.f32.mrf.mxu1 }
 0x10a   : > { %v1100_v3 = vadd.f32 %v1099_v0, %v792_v62  ;;  %v1165_v16 = vmul.f32 %v1045_v2, %v3878_v6  ;;  %v3985_v0 = vld [vmem:[%s4637_s4 + $0x18] sm:$0xff]   ;;  %v3995_v2 = vld [vmem:[%s4637_s4 + $0x10] sm:$0xff]  }
 0x10b   : > { %v1048_v4 = vpop.f32.mrf.mxu0  ;;  %v1101_v5 = vpop.f32.mrf.mxu1 }
 0x10c   : > { %v1102_v9 = vadd.f32 %v1101_v5, %v788_v58  ;;  %v1049_v10 = vadd.f32 %v1048_v4, %v780_v59  ;;  %v1169_v17 = vmul.f32 %v1100_v3, %v3883_v8 }
 0x10d   : > { %v3885_v11 = vpop.f32.mrf.mxu0  ;;  %v1103_v12 = vpop.f32.mrf.mxu1 }
 0x10e   : > { %v3892_v14 = vpack.c.bf16 %v1102_v9, %v1098_v1  ;;  %v1104_v18 = vadd.f32 %v1103_v12, %v792_v62  ;;  %v1166_v24 = vmul.f32 %v1049_v10, %v3890_v13  ;;  %v1173_v34 = vadd.f32 %v1169_v17, %v1165_v16  ;;  %v3990_v1 = vld [vmem:[%s4637_s4 + $0x50] sm:$0xff]   ;;  %v4006_v9 = vld [vmem:[%s4637_s4 + $0x48] sm:$0xff]   ;;  %v4016_v12 = vld [vmem:[%s4637_s4 + $0x40] sm:$0xff]  }
 0x10f   : > { %v1054_v19 = vpop.f32.mrf.mxu0  ;;  %v1107_v20 = vpop.f32.mrf.mxu1  ;;  %v4011_v10 = vld [vmem:[%s4637_s4 + $0x8] sm:$0xff]  }
 0x110   : > { %v1055_v23 = vadd.f32 %v1054_v19, %v780_v59  ;;  %v1170_v25 = vmul.f32 %v1104_v18, %v3897_v15  ;;  %v1685_v30 = vmul.bf16 %v3904_v21, %v3892_v14  ;;  %v1692_v31 = vmul.bf16 %v3909_v22, %v3892_v14 }
 0x111   : > { %v3918_v27 = vpop.f32.mrf.mxu0  ;;  %v1109_v29 = vpop.f32.mrf.mxu1  ;;  %v1108_v32 = vadd.f32 %v1107_v20, %v788_v58 }
 0x112   : > { %v1110_v33 = vadd.f32 %v1109_v29, %v792_v62  ;;  %v1174_v35 = vadd.f32 %v1170_v25, %v1166_v24  ;;  %v1167_v38 = vmul.f32 %v1055_v23, %v3916_v26  ;;  %v4029_v23 = vld [vmem:[%s4637_s4] sm:$0xff]  }
 0x113   : > { %v1058_v36 = vpop.f32.mrf.mxu0  ;;  %v1111_v37 = vpop.f32.mrf.mxu1 }
 0x114   : > { %v1171_v39 = vmul.f32 %v1110_v33, %v3923_v28  ;;  %v1059_v41 = vadd.f32 %v1058_v36, %v780_v59  ;;  %v1112_v42 = vadd.f32 %v1111_v37, %v788_v58  ;;  %v3936_v43 = vpack.c.bf16 %v1174_v35, %v1173_v34  ;;  %v3968_v58 = vld [vmem:[%s4637_s4 + $0x60] sm:$0xff]  }
 0x115   : > { %v1113_v44 = vpop.f32.mrf.mxu1  ;;  %v3973_v59 = vld [vmem:[%s4637_s4 + $0x20] sm:$0xff]  }
 0x116   : > { %v3938_v45 = vpack.c.bf16 %v1112_v42, %v1108_v32  ;;  %3120 = vmatprep.mubr.bf16.mxu1 %v3936_v43  ;;  %v1168_v48 = vmul.f32 %v1059_v41, %v3934_v40  ;;  %v1114_v49 = vadd.f32 %v1113_v44, %v792_v62  ;;  %v1175_v56 = vadd.f32 %v1171_v39, %v1167_v38  ;;  %v1060_v42 = vpop.f32.mrf.mxu0 }
 0x117   : > { %v795_v38 = vsub.s32 4, %v3858_v53  ;;  %v4662_v39 = vsub.s32 1, %v3858_v53 }
 0x118   : > { %v1709_v61 = vmul.bf16 %v3946_v47, %v3938_v45  ;;  %v1172_v62 = vmul.f32 %v1114_v49, %v724_v46  ;;  %v1701_v3 = vmul.bf16 %v3904_v21, %v3938_v45  ;;  %v1708_v4 = vmul.bf16 %v3909_v22, %v3938_v45 }
 0x119   : > { %v1700_v5 = vmul.bf16 %v3953_v50, %v3938_v45  ;;  %v1707_v16 = vmul.bf16 %v3958_v51, %v3938_v45  ;;  %v1699_v17 = vmul.bf16 %v3963_v52, %v3938_v45  ;;  %v1706_v18 = vmul.bf16 %v3968_v58, %v3938_v45 }
 0x11a   : > { %v1698_v19 = vmul.bf16 %v3973_v59, %v3938_v45  ;;  %v1176_v20 = vadd.f32 %v1172_v62, %v1168_v48  ;;  %v1705_v24 = vmul.bf16 %v3978_v60, %v3938_v45  ;;  %v1697_v25 = vmul.bf16 %v3985_v0, %v3938_v45 }
 0x11b   : > { %v1704_v29 = vmul.bf16 %v3990_v1, %v3938_v45  ;;  %v796_v41 = vrot.slane %v3864_v57, %v795_v38  ;;  %v784_v44 = vrot.slane %v3864_v57, %v4662_v39 }
 0x11c   : > { %v4045_v36 = vpack.c.bf16 %v1176_v20, %v1175_v56 }
 0x11d   : > { %v1057_v56 = vadd.f32 %v3918_v27, %v784_v44  ;;  %v1061_v20 = vadd.f32 %v1060_v42, %v784_v44  ;;  %v1047_v55 = vadd.f32 %v3873_v63, %v784_v44  ;;  %v1051_v37 = vadd.f32 %v3885_v11, %v784_v44 }
 0x11e   : > { %3138 = vmatprep.mubr.bf16.mxu0 %v4045_v36 }
 0x11f   : > { %v1179_v34 = vmul.f32 %v1057_v56, %v3916_v26  ;;  %v1180_v57 = vmul.f32 %v1061_v20, %v3934_v40  ;;  %v1177_v42 = vmul.f32 %v1047_v55, %v3878_v6 }
 0x127   : > { %v3270_v48 = vpop.f32.mrf.mxu0 }
 0x128   : > { %v1159_v49 = vadd.f32 %v3270_v48, %v796_v41 }
 0x129   : > { %v1150_v62 = vpop.f32.mrf.mxu0 }
 0x12a   : > { %v1151_v54 = vadd.f32 %v1150_v62, %v796_v41  ;;  %v1183_v35 = vmul.f32 %v1159_v49, %v3923_v28  ;;  %v1178_v62 = vmul.f32 %v1051_v37, %v3890_v13 }
 0x12b   : > { %v3271_v7 = vpop.f32.mrf.mxu0 }
 0x12c   : > { %v1162_v38 = vadd.f32 %v3271_v7, %v796_v41  ;;  %v1181_v48 = vmul.f32 %v1151_v54, %v3883_v8  ;;  %v1187_v63 = vadd.f32 %v1183_v35, %v1179_v34 }
 0x12d   : > { %v1153_v33 = vpop.f32.mrf.mxu0 }
 0x12e   : > { %v1184_v39 = vmul.f32 %v1162_v38, %v724_v46  ;;  %v1154_v27 = vadd.f32 %v1153_v33, %v796_v41  ;;  %v1185_v44 = vadd.f32 %v1181_v48, %v1177_v42 }
 0x130   : > { %v1188_v32 = vadd.f32 %v1184_v39, %v1180_v57  ;;  %v1182_v11 = vmul.f32 %v1154_v27, %v3897_v15 }
 0x132   : > { %v4066_v28 = vpack.c.bf16 %v1188_v32, %v1187_v63  ;;  %v1186_v7 = vadd.f32 %v1182_v11, %v1178_v62 }
 0x134   : > { %v4068_v26 = vpack.c.bf16 %v1186_v7, %v1185_v44  ;;  %v1350_v40 = vmul.bf16 %v3946_v47, %v4066_v28  ;;  %v1342_v54 = vmul.bf16 %v3904_v21, %v4066_v28  ;;  %v1349_v6 = vmul.bf16 %v3909_v22, %v4066_v28 }
 0x135   : > { %v1341_v15 = vmul.bf16 %v3953_v50, %v4066_v28  ;;  %v1348_v46 = vmul.bf16 %v3958_v51, %v4066_v28  ;;  %v1340_v34 = vmul.bf16 %v3963_v52, %v4066_v28  ;;  %v1347_v35 = vmul.bf16 %v3968_v58, %v4066_v28 }
 0x136   : > { %3122 = vmatprep.subr.bf16.mxu0 %v1350_v40  ;;  %v1334_v55 = vmul.bf16 %v3946_v47, %v4068_v26  ;;  %v1326_v8 = vmul.bf16 %v3904_v21, %v4068_v26  ;;  %v1333_v13 = vmul.bf16 %v3909_v22, %v4068_v26  ;;  %v1325_v32 = vmul.bf16 %v3953_v50, %v4068_v26 }
 0x137   : > { %3123 = vmatpush3.bf16.xpose.msra.mxu0 %v1342_v54  ;;  %v1332_v33 = vmul.bf16 %v3958_v51, %v4068_v26  ;;  %v1324_v37 = vmul.bf16 %v3963_v52, %v4068_v26  ;;  %v1331_v39 = vmul.bf16 %v3968_v58, %v4068_v26  ;;  %v1339_v41 = vmul.bf16 %v3973_v59, %v4066_v28 }
 0x138   : > { %3104 = vmatprep.subr.bf16.mxu1 %v1334_v55  ;;  %3124 = vmatprep.subr.bf16.mxu0 %v1349_v6  ;;  %v1346_v49 = vmul.bf16 %v3978_v60, %v4066_v28  ;;  %v1323_v56 = vmul.bf16 %v3973_v59, %v4068_v26  ;;  %v1330_v20 = vmul.bf16 %v3978_v60, %v4068_v26 }
 0x139   : > { %3105 = vmatpush3.bf16.xpose.msra.mxu1 %v1326_v8  ;;  %v1338_v38 = vmul.bf16 %v3985_v0, %v4066_v28  ;;  %v1345_v57 = vmul.bf16 %v3990_v1, %v4066_v28  ;;  %v1322_v48 = vmul.bf16 %v3985_v0, %v4068_v26  ;;  %v1329_v27 = vmul.bf16 %v3990_v1, %v4068_v26 }
 0x13a   : > { %3106 = vmatprep.subr.bf16.mxu1 %v1333_v13  ;;  %v1337_v42 = vmul.bf16 %v3995_v2, %v4066_v28  ;;  %v1344_v62 = vmul.bf16 %v4006_v9, %v4066_v28  ;;  %v1321_v63 = vmul.bf16 %v3995_v2, %v4068_v26  ;;  %v1328_v11 = vmul.bf16 %v4006_v9, %v4068_v26 }
 0x13b   : > { %v1336_v44 = vmul.bf16 %v4011_v10, %v4066_v28  ;;  %v1343_v7 = vmul.bf16 %v4016_v12, %v4066_v28  ;;  %v1320_v40 = vmul.bf16 %v4011_v10, %v4068_v26  ;;  %v1327_v54 = vmul.bf16 %v4016_v12, %v4068_v26 }
 0x13c   : > { %v1693_v55 = vmul.bf16 %v3946_v47, %v3892_v14  ;;  %v1335_v6 = vmul.bf16 %v4029_v23, %v4066_v28  ;;  %v1319_v8 = vmul.bf16 %v4029_v23, %v4068_v26  ;;  %v1684_v28 = vmul.bf16 %v3953_v50, %v3892_v14  ;;  %v1526_v47 = vld [vmem:[%s4638_s5 + $0xd8] sm:$0xff] }
 0x13d   : > { %v1691_v26 = vmul.bf16 %v3958_v51, %v3892_v14  ;;  %v1681_v13 = vmul.bf16 %v3985_v0, %v3892_v14  ;;  %v4677_v22 = vmul.bf16 %v3995_v2, %v3938_v45  ;;  %v4678_v50 = vmul.bf16 %v4006_v9, %v3938_v45 }
 0x13f   : > { %3125 = vmatpush3.bf16.xpose.msra.mxu0 %v1341_v15  ;;  %v1688_v15 = vmul.bf16 %v3990_v1, %v3892_v14  ;;  %v4681_v1 = vmul.bf16 %v4029_v23, %v3938_v45 }
 0x140   : > { %3126 = vmatprep.subr.bf16.mxu0 %v1348_v46  ;;  %v1680_v46 = vmul.bf16 %v3995_v2, %v3892_v14 }
 0x141   : > { %3107 = vmatpush3.bf16.xpose.msra.mxu1 %v1325_v32  ;;  %v1687_v32 = vmul.bf16 %v4006_v9, %v3892_v14  ;;  %v3451_v9 = vld [vmem:[%s3758_s22 + $0x28] sm:$0xff]  }
 0x142   : > { %3108 = vmatprep.subr.bf16.mxu1 %v1332_v33  ;;  %v1679_v33 = vmul.bf16 %v4011_v10, %v3892_v14 }
 0x147   : > { %3127 = vmatpush3.bf16.xpose.msra.mxu0 %v1340_v34  ;;  %v1686_v34 = vmul.bf16 %v4016_v12, %v3892_v14 }
 0x148   : > { %3128 = vmatprep.subr.bf16.mxu0 %v1347_v35  ;;  %v1678_v35 = vmul.bf16 %v4029_v23, %v3892_v14  ;;  %v3460_v23 = vld [vmem:[%s3783_s0 + $0xb0] ss:$12 sps:$4 sm:$0xff]  }
 0x149   : > { %3109 = vmatpush3.bf16.xpose.msra.mxu1 %v1324_v37  ;;  %v1530_v37 = vld [vmem:[%s4638_s5 + $0xf8] sm:$0xff] }
 0x14a   : > { %3110 = vmatprep.subr.bf16.mxu1 %v1331_v39  ;;  %v1529_v39 = vld [vmem:[%s4638_s5 + $0xf0] sm:$0xff] }
 0x14f   : > { %3129 = vmatpush3.bf16.xpose.msra.mxu0 %v1339_v41  ;;  %v1528_v41 = vld [vmem:[%s4638_s5 + $0xe8] sm:$0xff] }
 0x150   : > { %3130 = vmatprep.subr.bf16.mxu0 %v1346_v49  ;;  %v1524_v49 = vld [vmem:[%s4638_s5 + $0xc8] sm:$0xff] }
 0x151   : > { %3111 = vmatpush3.bf16.xpose.msra.mxu1 %v1323_v56  ;;  %v1523_v56 = vld [vmem:[%s4638_s5 + $0xc0] sm:$0xff] }
 0x152   : > { %3112 = vmatprep.subr.bf16.mxu1 %v1330_v20  ;;  %v1522_v20 = vld [vmem:[%s4638_s5 + $0xb8] sm:$0xff] }
 0x157   : > { %3131 = vmatpush3.bf16.xpose.msra.mxu0 %v1338_v38  ;;  %v1521_v38 = vld [vmem:[%s4638_s5 + $0xb0] sm:$0xff] }
 0x158   : > { %3132 = vmatprep.subr.bf16.mxu0 %v1345_v57  ;;  %v1520_v57 = vld [vmem:[%s4638_s5 + $0xa8] sm:$0xff] }
 0x159   : > { %3113 = vmatpush3.bf16.xpose.msra.mxu1 %v1322_v48  ;;  %v1519_v48 = vld [vmem:[%s4638_s5 + $0xa0] sm:$0xff] }
 0x15a   : > { %3114 = vmatprep.subr.bf16.mxu1 %v1329_v27  ;;  %v1518_v27 = vld [vmem:[%s4638_s5 + $0x98] sm:$0xff] }
 0x15f   : > { %3133 = vmatpush3.bf16.xpose.msra.mxu0 %v1337_v42  ;;  %v1517_v42 = vld [vmem:[%s4638_s5 + $0x90] sm:$0xff] }
 0x160   : > { %3134 = vmatprep.subr.bf16.mxu0 %v1344_v62  ;;  %v1516_v62 = vld [vmem:[%s4638_s5 + $0x88] sm:$0xff] }
 0x161   : > { %3115 = vmatpush3.bf16.xpose.msra.mxu1 %v1321_v63  ;;  %v1515_v63 = vld [vmem:[%s4638_s5 + $0x80] sm:$0xff] }
 0x162   : > { %3116 = vmatprep.subr.bf16.mxu1 %v1328_v11  ;;  %v1514_v11 = vld [vmem:[%s4638_s5 + $0x78] sm:$0xff] }
 0x167   : > { %3135 = vmatpush3.bf16.xpose.msra.mxu0 %v1336_v44  ;;  %v1513_v44 = vld [vmem:[%s4638_s5 + $0x70] sm:$0xff] }
 0x168   : > { %3136 = vmatprep.subr.bf16.mxu0 %v1343_v7  ;;  %v1512_v7 = vld [vmem:[%s4638_s5 + $0x68] sm:$0xff] }
 0x169   : > { %3117 = vmatpush3.bf16.xpose.msra.mxu1 %v1320_v40  ;;  %v1511_v40 = vld [vmem:[%s4638_s5 + $0x60] sm:$0xff] }
 0x16a   : > { %3118 = vmatprep.subr.bf16.mxu1 %v1327_v54  ;;  %v1510_v54 = vld [vmem:[%s4638_s5 + $0x58] sm:$0xff] }
 0x16f   : > { %3137 = vmatpush3.bf16.xpose.msra.mxu0 %v1335_v6  ;;  %v1508_v6 = vld [vmem:[%s4638_s5 + $0x48] sm:$0xff] }
 0x170   : > { %3140 = vmatprep.subr.bf16.mxu0 %v1693_v55  ;;  %v1509_v55 = vld [vmem:[%s4638_s5 + $0x50] sm:$0xff] }
 0x171   : > { %3119 = vmatpush3.bf16.xpose.msra.mxu1 %v1319_v8  ;;  %v1507_v8 = vld [vmem:[%s4638_s5 + $0x40] sm:$0xff] }
 0x172   : > { %1563 = vmatprep.subr.mxu1 %v1530_v37  ;;  %v1557_v37 = vld [vmem:[%s4638_s5 + $0x1d0] sm:$0xff] }
 0x176   : > { %3139 = vmatmul.mubr.bf16.vlgmr.msra.gmra.mxu0 %v4045_v36  ;;  %v1683_v36 = vmul.bf16 %v3963_v52, %v3892_v14 }
 0x177   : > { %3141 = vmatpush3.bf16.msra.mxu0 %v1685_v30  ;;  %v1690_v30 = vmul.bf16 %v3968_v58, %v3892_v14  ;;  %v4679_v58 = vmul.bf16 %v4011_v10, %v3938_v45  ;;  %v3452_v10 = vld [vmem:[%s3758_s22 + $0x20] sm:$0xff]  }
 0x178   : > { %3121 = vmatmul.mubr.bf16.vlgmr.msra.gmra.mxu1 %v3936_v43  ;;  %3142 = vmatprep.subr.bf16.mxu0 %v1692_v31  ;;  %v1682_v43 = vmul.bf16 %v3973_v59, %v3892_v14  ;;  %v1689_v31 = vmul.bf16 %v3978_v60, %v3892_v14  ;;  %v1527_v14 = vld [vmem:[%s4638_s5 + $0xe0] sm:$0xff]  ;;  %v4680_v59 = vmul.bf16 %v4016_v12, %v3938_v45  ;;  %v3453_v45 = vld [vmem:[%s3758_s22 + $0x18] sm:$0xff]   ;;  %v3454_v12 = vld [vmem:[%s3758_s22 + $0x10] sm:$0xff]  }
 0x179   : > { %1564 = vmatpush1.msra.mxu1 %v1529_v39  ;;  %v1556_v39 = vld [vmem:[%s4638_s5 + $0x1c8] sm:$0xff] }
 0x17a   : > { %1565 = vmatprep.subr.mxu1 %v1528_v41  ;;  %v1555_v41 = vld [vmem:[%s4638_s5 + $0x1c0] sm:$0xff] }
 0x17b   : > { %3143 = vmatpush3.bf16.msra.mxu0 %v1684_v28  ;;  %1566 = vmatpush1.msra.mxu1 %v1527_v14  ;;  %v1506_v28 = vld [vmem:[%s4638_s5 + $0x38] sm:$0xff] }
 0x17c   : > { %3144 = vmatprep.subr.bf16.mxu0 %v1691_v26  ;;  %1567 = vmatprep.subr.mxu1 %v1526_v47  ;;  %v1505_v26 = vld [vmem:[%s4638_s5 + $0x30] sm:$0xff]  ;;  %v1554_v14 = vld [vmem:[%s4638_s5 + $0x1b8] sm:$0xff] }
 0x17d   : > { %v1553_v47 = vld [vmem:[%s4638_s5 + $0x1b0] sm:$0xff] }
 0x17f   : > { %3145 = vmatpush3.bf16.msra.mxu0 %v1683_v36  ;;  %v1504_v36 = vld [vmem:[%s4638_s5 + $0x28] sm:$0xff] }
 0x180   : > { %3146 = vmatprep.subr.bf16.mxu0 %v1690_v30  ;;  %v1503_v30 = vld [vmem:[%s4638_s5 + $0x20] sm:$0xff] }
 0x183   : > { %3147 = vmatpush3.bf16.msra.mxu0 %v1682_v43  ;;  %v1502_v43 = vld [vmem:[%s4638_s5 + $0x18] sm:$0xff] }
 0x184   : > { %3148 = vmatprep.subr.bf16.mxu0 %v1689_v31  ;;  %v1501_v31 = vld [vmem:[%s4638_s5 + $0x10] sm:$0xff] }
 0x187   : > { %3149 = vmatpush3.bf16.msra.mxu0 %v1681_v13  ;;  %v1500_v13 = vld [vmem:[%s4638_s5 + $0x8] sm:$0xff] }
 0x188   : > { %3150 = vmatprep.subr.bf16.mxu0 %v1688_v15  ;;  %v1499_v15 = vld [vmem:[%s4638_s5] sm:$0xff] }
 0x18b   : > { %3151 = vmatpush3.bf16.msra.mxu0 %v1680_v46  ;;  %v1562_v46 = vld [vmem:[%s4638_s5 + $0x1f8] sm:$0xff] }
 0x18c   : > { %3152 = vmatprep.subr.bf16.mxu0 %v1687_v32  ;;  %v1561_v32 = vld [vmem:[%s4638_s5 + $0x1f0] sm:$0xff] }
 0x18f   : > { %3153 = vmatpush3.bf16.msra.mxu0 %v1679_v33  ;;  %v1560_v33 = vld [vmem:[%s4638_s5 + $0x1e8] sm:$0xff] }
 0x190   : > { %3154 = vmatprep.subr.bf16.mxu0 %v1686_v34  ;;  %v1559_v34 = vld [vmem:[%s4638_s5 + $0x1e0] sm:$0xff] }
 0x193   : > { %3155 = vmatpush3.bf16.msra.mxu0 %v1678_v35  ;;  %v1558_v35 = vld [vmem:[%s4638_s5 + $0x1d8] sm:$0xff] }
 0x194   : > { %3162 = vmatprep.subr.bf16.mxu0 %v1709_v61  ;;  %v1525_v61 = vld [vmem:[%s4638_s5 + $0xd0] sm:$0xff] }
 0x195   : > { %1568 = vmatpush1.msra.mxu1 %v1525_v61 }
 0x196   : > { %1569 = vmatprep.subr.mxu1 %v1524_v49 }
 0x197   : > { %1570 = vmatpush1.msra.mxu1 %v1523_v56 }
 0x198   : > { %1571 = vmatprep.subr.mxu1 %v1522_v20 }
 0x199   : > { %1572 = vmatpush1.msra.mxu1 %v1521_v38  ;;  %v1451_v38 = vld [vmem:[%s4676_s26 + $0x20] sm:$0xff] }
 0x19a   : > { %1573 = vmatprep.subr.mxu1 %v1520_v57  ;;  %v1452_v57 = vld [vmem:[%s4676_s26 + $0x28] sm:$0xff] }
 0x19b   : > { %1574 = vmatpush1.msra.mxu1 %v1519_v48 }
 0x19c   : > { %1575 = vmatprep.subr.mxu1 %v1518_v27 }
 0x19d   : > { %1576 = vmatpush1.msra.mxu1 %v1517_v42 }
 0x19e   : > { %1577 = vmatprep.subr.mxu1 %v1516_v62 }
 0x19f   : > { %1578 = vmatpush1.msra.mxu1 %v1515_v63 }
 0x1a0   : > { %1579 = vmatprep.subr.mxu1 %v1514_v11 }
 0x1a1   : > { %1580 = vmatpush1.msra.mxu1 %v1513_v44 }
 0x1a2   : > { %1581 = vmatprep.subr.mxu1 %v1512_v7 }
 0x1a3   : > { %1582 = vmatpush1.msra.mxu1 %v1511_v40  ;;  %v1447_v40 = vld [vmem:[%s4676_s26] sm:$0xff] }
 0x1a4   : > { %1583 = vmatprep.subr.mxu1 %v1510_v54  ;;  %v1448_v54 = vld [vmem:[%s4676_s26 + $0x8] sm:$0xff] }
 0x1a5   : > { %1584 = vmatpush1.msra.mxu1 %v1509_v55  ;;  %v1453_v55 = vld [vmem:[%s4676_s26 + $0x30] sm:$0xff] }
 0x1a6   : > { %1585 = vmatprep.subr.mxu1 %v1508_v6 }
 0x1a7   : > { %1586 = vmatpush1.msra.mxu1 %v1507_v8 }
 0x1a8   : > { %1587 = vmatprep.subr.mxu1 %v1506_v28  ;;  %v1454_v28 = vld [vmem:[%s4676_s26 + $0x38] sm:$0xff] }
 0x1a9   : > { %1588 = vmatpush1.msra.mxu1 %v1505_v26 }
 0x1aa   : > { %1589 = vmatprep.subr.mxu1 %v1504_v36 }
 0x1ab   : > { %1590 = vmatpush1.msra.mxu1 %v1503_v30 }
 0x1ac   : > { %1591 = vmatprep.subr.mxu1 %v1502_v43  ;;  %v1449_v43 = vld [vmem:[%s4676_s26 + $0x10] sm:$0xff] }
 0x1ad   : > { %1592 = vmatpush1.msra.mxu1 %v1501_v31 }
 0x1ae   : > { %1593 = vmatprep.subr.mxu1 %v1500_v13  ;;  %v1450_v13 = vld [vmem:[%s4676_s26 + $0x18] sm:$0xff] }
 0x1af   : > { %1594 = vmatpush1.msra.mxu1 %v1499_v15 }
 0x1b0   : > { %1595 = vmatprep.subr.mxu1 %v1562_v46 }
 0x1b1   : > { %1596 = vmatpush2.msra.mxu1 %v1561_v32 }
 0x1b2   : > { %1597 = vmatprep.subr.mxu1 %v1560_v33 }
 0x1b3   : > { %1598 = vmatpush2.msra.mxu1 %v1559_v34 }
 0x1b4   : > { %1599 = vmatprep.subr.mxu1 %v1558_v35 }
 0x1b5   : > { %1600 = vmatpush2.msra.mxu1 %v1557_v37 }
 0x1b6   : > { %1601 = vmatprep.subr.mxu1 %v1556_v39 }
 0x1b7   : > { %1602 = vmatpush2.msra.mxu1 %v1555_v41 }
 0x1b8   : > { %1603 = vmatprep.subr.mxu1 %v1554_v14 }
 0x1b9   : > { %1604 = vmatpush2.msra.mxu1 %v1553_v47  ;;  %v1552_v47 = vld [vmem:[%s4638_s5 + $0x1a8] sm:$0xff] }
 0x1ba   : > { %1605 = vmatprep.subr.mxu1 %v1552_v47 }
 0x236   : > { %v1430_v61 = vpop.f32.mrf.mxu0 }
 0x237   : > { %v1443_v49 = vmul.f32 0.35355338, %v1430_v61  ;;  %v1551_v61 = vld [vmem:[%s4638_s5 + $0x1a0] sm:$0xff] }
 0x238   : > { %v1387_v56 = vpop.f32.mrf.mxu1  ;;  %v1432_v20 = vpop.f32.mrf.mxu0  ;;  %1606 = vmatpush2.msra.mxu1 %v1551_v61 }
 0x239   : > { %v1444_v48 = vmul.f32 0.35355338, %v1432_v20  ;;  %v1439_v27 = vmul.f32 0.35355338, %v1387_v56  ;;  %v4305_v44 = vadd.f32 %v1451_v38, %v1443_v49  ;;  %v1550_v49 = vld [vmem:[%s4638_s5 + $0x198] sm:$0xff]  ;;  %v1549_v56 = vld [vmem:[%s4638_s5 + $0x190] sm:$0xff] }
 0x23a   : > { %v1389_v42 = vpop.f32.mrf.mxu1  ;;  %v1434_v62 = vpop.f32.mrf.mxu0  ;;  %1607 = vmatprep.subr.mxu1 %v1550_v49  ;;  %v1548_v20 = vld [vmem:[%s4638_s5 + $0x188] sm:$0xff]  ;;  %v1547_v38 = vld [vmem:[%s4638_s5 + $0x180] sm:$0xff] }
 0x23b   : > { %v1440_v63 = vmul.f32 0.35355338, %v1389_v42  ;;  %v1445_v11 = vmul.f32 0.35355338, %v1434_v62  ;;  %v4307_v7 = vadd.f32 %v1452_v57, %v1444_v48  ;;  %v1455_v15 = vadd.f32 %v1447_v40, %v1439_v27  ;;  %1608 = vmatpush2.msra.mxu1 %v1549_v56  ;;  %v1546_v57 = vld [vmem:[%s4638_s5 + $0x178] sm:$0xff]  ;;  %v1545_v48 = vld [vmem:[%s4638_s5 + $0x170] sm:$0xff] }
 0x23c   : > { %v1391_v6 = vpop.f32.mrf.mxu1  ;;  %v1436_v8 = vpop.f32.mrf.mxu0  ;;  %1609 = vmatprep.subr.mxu1 %v1548_v20  ;;  %v1544_v27 = vld [vmem:[%s4638_s5 + $0x168] sm:$0xff]  ;;  %v1543_v42 = vld [vmem:[%s4638_s5 + $0x160] sm:$0xff]  ;;  %v1542_v62 = vld [vmem:[%s4638_s5 + $0x158] sm:$0xff] }
 0x23d   : > { %v1441_v26 = vmul.f32 0.35355338, %v1391_v6  ;;  %v1446_v36 = vmul.f32 0.35355338, %v1436_v8  ;;  %v1469_v30 = vmax.f32 %v4305_v44, %v4307_v7  ;;  %v1456_v46 = vadd.f32 %v1448_v54, %v1440_v63  ;;  %1610 = vmatpush2.msra.mxu1 %v1547_v38  ;;  %v1541_v63 = vld [vmem:[%s4638_s5 + $0x150] sm:$0xff]  ;;  %v1539_v40 = vld [vmem:[%s4638_s5 + $0x140] sm:$0xff] }
 0x23e   : > { %v1393_v31 = vpop.f32.mrf.mxu1  ;;  %v4329_v32 = vadd.f32 %v1453_v55, %v1445_v11  ;;  %1611 = vmatprep.subr.mxu1 %v1546_v57  ;;  %v1540_v11 = vld [vmem:[%s4638_s5 + $0x148] sm:$0xff]  ;;  %v1538_v54 = vld [vmem:[%s4638_s5 + $0x138] sm:$0xff]  ;;  %v1537_v55 = vld [vmem:[%s4638_s5 + $0x130] sm:$0xff] }
 0x23f   : > { %v4331_v33 = vadd.f32 %v1454_v28, %v1446_v36  ;;  %v1442_v34 = vmul.f32 0.35355338, %v1393_v31  ;;  %1470 = vmax.xlane.f32.xlu1 %v1469_v30  ;;  %v1463_v35 = vmax.f32 %v1455_v15, %v1456_v46  ;;  %v4333_v37 = vadd.f32 %v1449_v43, %v1441_v26  ;;  %1612 = vmatpush2.msra.mxu1 %v1545_v48  ;;  %v1536_v6 = vld [vmem:[%s4638_s5 + $0x128] sm:$0xff]  ;;  %v1535_v8 = vld [vmem:[%s4638_s5 + $0x120] sm:$0xff]  ;;  %v1534_v28 = vld [vmem:[%s4638_s5 + $0x118] sm:$0xff] }
 0x240   : > { %1613 = vmatprep.subr.mxu1 %v1544_v27  ;;  %v1533_v26 = vld [vmem:[%s4638_s5 + $0x110] sm:$0xff]  ;;  %v1532_v36 = vld [vmem:[%s4638_s5 + $0x108] sm:$0xff]  ;;  %v1531_v30 = vld [vmem:[%s4638_s5 + $0x100] sm:$0xff] }
 0x241   : > { %v4335_v39 = vadd.f32 %v1450_v13, %v1442_v34  ;;  %v1472_v41 = vmax.f32 %v4329_v32, %v4331_v33  ;;  %1464 = vmax.xlane.f32.xlu0 %v1463_v35  ;;  %1614 = vmatpush2.msra.mxu1 %v1543_v42 }
 0x242   : > { %1615 = vmatprep.subr.mxu1 %v1542_v62 }
 0x243   : > { %1473 = vmax.xlane.f32.xlu1 %v1472_v41  ;;  %v1466_v14 = vmax.f32 %v4333_v37, %v4335_v39  ;;  %1616 = vmatpush2.msra.mxu1 %v1541_v63 }
 0x244   : > { %1617 = vmatprep.subr.mxu1 %v1540_v11 }
 0x245   : > { %1467 = vmax.xlane.f32.xlu0 %v1466_v14  ;;  %1618 = vmatpush2.msra.mxu1 %v1539_v40 }
 0x246   : > { %1619 = vmatprep.subr.mxu1 %v1538_v54 }
 0x247   : > { %1620 = vmatpush2.msra.mxu1 %v1537_v55 }
 0x248   : > { %1621 = vmatprep.subr.mxu1 %v1536_v6 }
 0x249   : > { %1622 = vmatpush2.msra.mxu1 %v1535_v8 }
 0x24a   : > { %1623 = vmatprep.subr.mxu1 %v1534_v28 }
 0x24b   : > { %1624 = vmatpush2.msra.mxu1 %v1533_v26 }
 0x24c   : > { %1625 = vmatprep.subr.mxu1 %v1532_v36 }
 0x24d   : > { %1626 = vmatpush2.msra.mxu1 %v1531_v30 }
 0x2c8   : > { %v1471_v43 = vpop.xlane.xlu1 %1470 }
 0x2c9   : > { %v1480_v14 = vsub.f32 %v4307_v7, %v1471_v43  ;;  %v1479_v20 = vsub.f32 %v4305_v44, %v1471_v43 }
 0x2ca   : > { %v1465_v31 = vpop.xlane.xlu0 %1464 }
 0x2cb   : > { %v1475_v13 = vsub.f32 %v1455_v15, %v1465_v31  ;;  %v1476_v34 = vsub.f32 %v1456_v46, %v1465_v31  ;;  %v1493_v48 = vmul.f32 1.442695, %v1480_v14  ;;  %v1491_v46 = vmul.f32 1.442695, %v1479_v20 }
 0x2cc   : > { %v1474_v61 = vpop.xlane.xlu1 %1473 }
 0x2cd   : > { %v1483_v35 = vmul.f32 1.442695, %v1475_v13  ;;  %v1485_v41 = vmul.f32 1.442695, %v1476_v34  ;;  %v1482_v15 = vsub.f32 %v4331_v33, %v1474_v61  ;;  %v1481_v7 = vsub.f32 %v4329_v32, %v1474_v61 }
 0x2ce   : > { %v1468_v47 = vpop.xlane.xlu0 %1467 }
 0x2cf   : > { %3513 = vpow2.f32 %v1483_v35  ;;  %v1477_v49 = vsub.f32 %v4333_v37, %v1468_v47  ;;  %v1478_v56 = vsub.f32 %v4335_v39, %v1468_v47  ;;  %v1497_v27 = vmul.f32 1.442695, %v1482_v15 }
 0x2d0   : > { %3515 = vpow2.f32 %v1485_v41  ;;  %v1495_v42 = vmul.f32 1.442695, %v1481_v7 }
 0x2d1   : > { %v1487_v38 = vmul.f32 1.442695, %v1477_v49  ;;  %v1489_v57 = vmul.f32 1.442695, %v1478_v56 }
 0x2d3   : > { %3517 = vpow2.f32 %v1487_v38 }
 0x2d4   : > { %3519 = vpow2.f32 %v1489_v57 }
 0x2d5   : > { %3521 = vpow2.f32 %v1493_v48 }
 0x2d6   : > { %3523 = vpow2.f32 %v1491_v46 }
 0x2d7   : > { %3525 = vpow2.f32 %v1497_v27 }
 0x2d8   : > { %3527 = vpow2.f32 %v1495_v42 }
 0x2dc   : > { %v3514_v37 = vpop.eup %3513 }
 0x2dd   : > { %v3516_v39 = vpop.eup %3515 }
 0x2de   : > { %1627 = vmatprep.mubr.f32.mxu1 %v3516_v39 }
 0x2df   : > { %1628 = vmatmul.mubr.f32.vlgmr.msra.gmra.mxu1 %v3514_v37 }
 0x2e0   : > { %v3518_v44 = vpop.eup %3517 }
 0x2e1   : > { %v3520_v62 = vpop.eup %3519 }
 0x2e2   : > { %1633 = vmatprep.mubr.f32.mxu1 %v3520_v62  ;;  %v3522_v63 = vpop.eup %3521 }
 0x2e3   : > { %1634 = vmatmul.mubr.f32.gmra.mxu1 %v3518_v44  ;;  %v4413_v33 = vpop.eup %3523 }
 0x2e4   : > { %1639 = vmatprep.mubr.f32.mxu1 %v3522_v63  ;;  %v3526_v11 = vpop.eup %3525 }
 0x2e5   : > { %v3528_v32 = vpop.eup %3527 }
 0x2e7   : > { %1640 = vmatmul.mubr.f32.gmra.mxu1 %v4413_v33 }
 0x2e8   : > { %1645 = vmatprep.mubr.f32.mxu1 %v3526_v11 }
 0x2eb   : > { %1646 = vmatmul.mubr.f32.gmra.mxu1 %v3528_v32 }
 0x39f   : > { %v1629_v40 = vpop.f32.mrf.mxu1 }
 0x3a0   : > { %v1652_v6 = vmax.f32 %v1629_v40, 1e-30 }
 0x3a1   : > { %v1631_v54 = vpop.f32.mrf.mxu1 }
 0x3a2   : > { %v1653_v55 = vmax.f32 %v1631_v54, 1e-30 }
 0x3a3   : > { %v1635_v8 = vpop.f32.mrf.mxu1 }
 0x3a4   : > { %v1654_v28 = vmax.f32 %v1635_v8, 1e-30  ;;  %3529 = vrcp.f32 %v1653_v55 }
 0x3a5   : > { %v1637_v26 = vpop.f32.mrf.mxu1 }
 0x3a6   : > { %3531 = vrcp.f32 %v1654_v28  ;;  %v1655_v36 = vmax.f32 %v1637_v26, 1e-30 }
 0x3a7   : > { %3533 = vrcp.f32 %v1652_v6  ;;  %v1641_v30 = vpop.f32.mrf.mxu1 }
 0x3a8   : > { %3535 = vrcp.f32 %v1655_v36  ;;  %v1656_v21 = vmax.f32 %v1641_v30, 1e-30 }
 0x3a9   : > { %v1643_v43 = vpop.f32.mrf.mxu1 }
 0x3aa   : > { %v1657_v31 = vmax.f32 %v1643_v43, 1e-30 }
 0x3ab   : > { %v1647_v13 = vpop.f32.mrf.mxu1 }
 0x3ac   : > { %3537 = vrcp.f32 %v1657_v31 }
 0x3ad   : > { %v1649_v34 = vpop.f32.mrf.mxu1 }
 0x3ae   : > { %v1659_v35 = vmax.f32 %v1649_v34, 1e-30  ;;  %v3464_v34 = vld [vmem:[%s3783_s0 + $0x98] ss:$12 sps:$4 sm:$0xff]  }
 0x3b0   : > { %3539 = vrcp.f32 %v1659_v35  ;;  %v3468_v35 = vld [vmem:[%s3783_s0 + $0x80] ss:$12 sps:$4 sm:$0xff]  }
 0x3b1   : > { %v3530_v41 = vpop.eup %3529 }
 0x3b2   : > { %v1669_v56 = vmul.f32 %v3530_v41, %v3516_v39  ;;  %v3465_v39 = vld [vmem:[%s3783_s0 + $0x78] ss:$12 sps:$4 sm:$0xff]   ;;  %v3472_v41 = vld [vmem:[%s3783_s0 + $0x68] ss:$12 sps:$4 sm:$0xff]  }
 0x3b3   : > { %v3532_v14 = vpop.eup %3531 }
 0x3b4   : > { %v3534_v47 = vpop.eup %3533  ;;  %v1670_v49 = vmul.f32 %v3532_v14, %v3518_v44  ;;  %v3471_v44 = vld [vmem:[%s3783_s0 + $0x64] ss:$12 sps:$4 sm:$0xff]  }
 0x3b5   : > { %v3536_v61 = vpop.eup %3535  ;;  %v1668_v38 = vmul.f32 %v3534_v47, %v3514_v37  ;;  %v1658_v37 = vmax.f32 %v1647_v13, 1e-30  ;;  %v3476_v14 = vld [vmem:[%s3783_s0 + $0x50] ss:$12 sps:$4 sm:$0xff]  }
 0x3b6   : > { %v1671_v20 = vmul.f32 %v3536_v61, %v3520_v62  ;;  %v3469_v62 = vld [vmem:[%s3783_s0 + $0x60] ss:$12 sps:$4 sm:$0xff]   ;;  %v3477_v47 = vld [vmem:[%s3783_s0 + $0x30] ss:$12 sps:$4 sm:$0xff]  }
 0x3b7   : > { %v1710_v48 = vpack.c.bf16 %v1670_v49, %v1668_v38  ;;  %3541 = vrcp.f32 %v1658_v37  ;;  %v3479_v61 = vld [vmem:[%s3783_s0 + $0x34] ss:$12 sps:$4 sm:$0xff]   ;;  %v3480_v49 = vld [vmem:[%s3783_s0 + $0x38] ss:$12 sps:$4 sm:$0xff]  }
 0x3b8   : > { %v1711_v57 = vpack.c.bf16 %v1671_v20, %v1669_v56  ;;  %3543 = vrcp.f32 %v1656_v21  ;;  %v3483_v56 = vld [vmem:[%s3783_s0 + $0x1c] ss:$12 sps:$4 sm:$0xff]   ;;  %v3481_v20 = vld [vmem:[%s3783_s0 + $0x18] ss:$12 sps:$4 sm:$0xff]   ;;  %v3484_v38 = vld [vmem:[%s3783_s0 + $0x20] ss:$12 sps:$4 sm:$0xff]  }
 0x3b9   : > { %v3538_v15 = vpop.eup %3537 }
 0x3ba   : > { %1746 = vmatprep.mubr.bf16.mxu0 %v1711_v57  ;;  %v1673_v7 = vmul.f32 %v3538_v15, %v3522_v63  ;;  %v3475_v63 = vld [vmem:[%s3783_s0 + $0x4c] ss:$12 sps:$4 sm:$0xff]   ;;  %v3488_v15 = vld [vmem:[%s3783_s0 + $0x8] ss:$12 sps:$4 sm:$0xff]  }
 0x3bb   : > { %1747 = vmatmul.mubr.bf16.vlgmr.msra.gmra.mxu0 %v1710_v48  ;;  %v3485_v57 = vld [vmem:[%s3783_s0] ss:$12 sps:$4 sm:$0xff]   ;;  %v3487_v48 = vld [vmem:[%s3783_s0 + $0x4] ss:$12 sps:$4 sm:$0xff]  }
 0x3bc   : > { %3163 = vmatpush3.bf16.msra.mxu0 %v1701_v3  ;;  %v4682_v3 = vmov 0  }
 0x3bd   : > { %v3540_v46 = vpop.eup %3539  ;;  %3164 = vmatprep.subr.bf16.mxu0 %v1708_v4  ;;  %v3449_v4 = vld [vmem:[%s3758_s22 + $0x38] sm:$0xff]  }
 0x3be   : > { %v1675_v27 = vmul.f32 %v3540_v46, %v3526_v11  ;;  %3272 = vmatprep.subr.bf16.mxu1 %v3449_v4 }
 0x3bf   : > { %3273 = vmatpush3.bf16.msra.mxu1 %v3449_v4 }
 0x3c0   : > { %3165 = vmatpush3.bf16.msra.mxu0 %v1700_v5  ;;  %v1713_v42 = vpack.c.bf16 %v1675_v27, %v1673_v7  ;;  %v3450_v5 = vld [vmem:[%s3758_s22 + $0x30] sm:$0xff]   ;;  %v3019_v27 = vld [vmem:[%s4683_s24] ss:$0 sm:$0xff] }
 0x3c1   : > { %3166 = vmatprep.subr.bf16.mxu0 %v1707_v16  ;;  %3274 = vmatprep.subr.bf16.mxu1 %v3450_v5  ;;  %v3455_v16 = vld [vmem:[%s3758_s22 + $0x8] sm:$0xff]  }
 0x3c2   : > { %1787 = vmatprep.mubr.bf16.mxu0 %v1713_v42 }
 0x3c3   : > { %3275 = vmatpush3.bf16.msra.mxu1 %v3450_v5 }
 0x3c4   : > { %3167 = vmatpush3.bf16.msra.mxu0 %v1699_v17  ;;  %v3542_v51 = vpop.eup %3541  ;;  %3276 = vmatprep.subr.bf16.mxu1 %v3451_v9  ;;  %v3456_v17 = vld [vmem:[%s3758_s22] sm:$0xff]  }
 0x3c5   : > { %3168 = vmatprep.subr.bf16.mxu0 %v1706_v18  ;;  %v3544_v52 = vpop.eup %3543  ;;  %v1674_v60 = vmul.f32 %v3542_v51, %v3528_v32  ;;  %v3457_v18 = vld [vmem:[%s3783_s0 + $0xa8] ss:$12 sps:$4 sm:$0xff]  }
 0x3c6   : > { %v1672_v0 = vmul.f32 %v3544_v52, %v4413_v33  ;;  %v3473_v33 = vld [vmem:[%s3783_s0 + $0x48] ss:$12 sps:$4 sm:$0xff]  }
 0x3c7   : > { %3277 = vmatpush3.bf16.msra.mxu1 %v3451_v9  ;;  %v3577_v52 = vld [vmem:[#allocation2 + $0x8] sm:$0xff] }
 0x3c8   : > { %3169 = vmatpush3.bf16.msra.mxu0 %v1698_v19  ;;  %v1712_v2 = vpack.c.bf16 %v1674_v60, %v1672_v0  ;;  %3278 = vmatprep.subr.bf16.mxu1 %v3452_v10  ;;  %v3459_v19 = vld [vmem:[%s3783_s0 + $0xac] ss:$12 sps:$4 sm:$0xff]   ;;  %v3579_v0 = vld [vmem:[#allocation2] sm:$0xff] }
 0x3c9   : > { %3170 = vmatprep.subr.bf16.mxu0 %v1705_v24  ;;  %v3463_v24 = vld [vmem:[%s3783_s0 + $0x94] ss:$12 sps:$4 sm:$0xff]  }
 0x3cb   : > { %3279 = vmatpush3.bf16.msra.mxu1 %v3452_v10  ;;  %v3489_v10 = vld [vmem:[%s3788_s25 + $0x78] sm:$0xff]  }
 0x3cc   : > { %3171 = vmatpush3.bf16.msra.mxu0 %v1697_v25  ;;  %3280 = vmatprep.subr.bf16.mxu1 %v3453_v45  ;;  %v3461_v25 = vld [vmem:[%s3783_s0 + $0x90] ss:$12 sps:$4 sm:$0xff]  }
 0x3cd   : > { %3172 = vmatprep.subr.bf16.mxu0 %v1704_v29  ;;  %v3467_v29 = vld [vmem:[%s3783_s0 + $0x7c] ss:$12 sps:$4 sm:$0xff]  }
 0x3cf   : > { %3281 = vmatpush3.bf16.msra.mxu1 %v3453_v45  ;;  %v3490_v45 = vld [vmem:[%s3788_s25 + $0x38] sm:$0xff]  }
 0x3d0   : > { %3173 = vmatpush3.bf16.msra.mxu0 %v4677_v22  ;;  %3282 = vmatprep.subr.bf16.mxu1 %v3454_v12 }
 0x3d1   : > { %3174 = vmatprep.subr.bf16.mxu0 %v4678_v50 }
 0x3d3   : > { %3283 = vmatpush3.bf16.msra.mxu1 %v3454_v12  ;;  %v3491_v12 = vld [vmem:[%s3788_s25 + $0xb8] sm:$0xff]  }
 0x3d4   : > { %3175 = vmatpush3.bf16.msra.mxu0 %v4679_v58  ;;  %3284 = vmatprep.subr.bf16.mxu1 %v3455_v16 }
 0x3d5   : > { %3176 = vmatprep.subr.bf16.mxu0 %v4680_v59  ;;  %v3578_v59 = vld [vmem:[#allocation2 + $0x10] sm:$0xff] }
 0x3d7   : > { %3285 = vmatpush3.bf16.msra.mxu1 %v3455_v16  ;;  %v3492_v16 = vld [vmem:[%s3788_s25 + $0x70] sm:$0xff]  }
 0x3d8   : > { %3177 = vmatpush3.bf16.msra.mxu0 %v4681_v1  ;;  %3286 = vmatprep.subr.bf16.mxu1 %v3456_v17 }
 0x3d9   : > { %2101 = vmatprep.subr.bf16.mxu0 %v3459_v19  ;;  %v3496_v19 = vld [vmem:[%s3788_s25 + $0x28] sm:$0xff]  }
 0x3db   : > { %1788 = vmatmul.mubr.bf16.vlgmr.msra.gmra.mxu0 %v1712_v2  ;;  %3287 = vmatpush3.bf16.msra.mxu1 %v3456_v17  ;;  %v3580_v2 = vld [vmem:[#allocation2 + $0x18] sm:$0xff]  ;;  %v3493_v17 = vld [vmem:[%s3788_s25 + $0x30] sm:$0xff]  }
 0x3dc   : > { %2133 = vmatprep.mubr.bf16.mxu0 %v4682_v3  ;;  %3292 = vmatprep.subr.bf16.mxu1 %v3460_v23 }
 0x3dd   : > { %2102 = vmatpush1.bf16.msra.mxu0 %v3457_v18  ;;  %v3494_v18 = vld [vmem:[%s3788_s25 + $0xb0] sm:$0xff]  }
 0x3de   : > { %2103 = vmatprep.subr.bf16.mxu0 %v3463_v24  ;;  %v3498_v24 = vld [vmem:[%s3788_s25 + $0x60] sm:$0xff]  }
 0x3e1   : > { %2104 = vmatpush1.bf16.msra.mxu0 %v3461_v25  ;;  %v3499_v25 = vld [vmem:[%s3788_s25 + $0x20] sm:$0xff]  }
 0x3e2   : > { %2105 = vmatprep.subr.bf16.mxu0 %v3467_v29  ;;  %v3500_v29 = vld [vmem:[%s3788_s25 + $0xa0] sm:$0xff]  }
 0x3e5   : > { %2106 = vmatpush1.bf16.msra.mxu0 %v3465_v39  ;;  %v3501_v39 = vld [vmem:[%s3788_s25 + $0x58] sm:$0xff]  }
 0x3e6   : > { %2107 = vmatprep.subr.bf16.mxu0 %v3471_v44  ;;  %v3502_v44 = vld [vmem:[%s3788_s25 + $0x18] sm:$0xff]  }
 0x3e9   : > { %2108 = vmatpush1.bf16.msra.mxu0 %v3469_v62  ;;  %v3503_v62 = vld [vmem:[%s3788_s25 + $0x98] sm:$0xff]  }
 0x3ea   : > { %2109 = vmatprep.subr.bf16.mxu0 %v3475_v63  ;;  %v3504_v63 = vld [vmem:[%s3788_s25 + $0x50] sm:$0xff]  }
 0x3ed   : > { %2110 = vmatpush1.bf16.msra.mxu0 %v3473_v33  ;;  %v3505_v33 = vld [vmem:[%s3788_s25 + $0x10] sm:$0xff]  }
 0x3ee   : > { %2111 = vmatprep.subr.bf16.mxu0 %v3479_v61 }
 0x3f1   : > { %2112 = vmatpush1.bf16.msra.mxu0 %v3477_v47 }
 0x3f2   : > { %2113 = vmatprep.subr.bf16.mxu0 %v3483_v56 }
 0x3f5   : > { %2114 = vmatpush1.bf16.msra.mxu0 %v3481_v20 }
 0x3f6   : > { %2115 = vmatprep.subr.bf16.mxu0 %v3487_v48 }
 0x3f9   : > { %2116 = vmatpush1.bf16.msra.mxu0 %v3485_v57 }
 0x3fa   : > { %3204 = vmatprep.subr.bf16.mxu0 %v3489_v10 }
 0x47b   : > { %v3156_v11 = vpop.f32.mrf.mxu0 }
 0x47d   : > { %v3157_v32 = vpop.f32.mrf.mxu0 }
 0x47e   : > { %v3158_v55 = vadd.f32 %v3157_v32, %v3156_v11  ;;  %v3506_v11 = vld [vmem:[%s3788_s25 + $0x90] sm:$0xff]   ;;  %v3507_v32 = vld [vmem:[%s3788_s25 + $0x48] sm:$0xff]  }
 0x47f   : > { %v3159_v40 = vpop.f32.mrf.mxu0 }
 0x481   : > { %v3160_v54 = vpop.f32.mrf.mxu0 }
 0x482   : > { %v3161_v6 = vadd.f32 %v3160_v54, %v3159_v40  ;;  %v3508_v40 = vld [vmem:[%s3788_s25 + $0x8] sm:$0xff]  }
 0x483   : > { %v3509_v54 = vld [vmem:[%s3788_s25 + $0x88] sm:$0xff]  }
 0x484   : > { %v1812_v8 = vpack.c.bf16 %v3161_v6, %v3158_v55  ;;  %v3510_v55 = vld [vmem:[%s3788_s25 + $0x40] sm:$0xff]  }
 0x485   : > { %v3511_v6 = vld [vmem:[%s3788_s25] sm:$0xff]  }
 0x486   : > { %3288 = vmatprep.mubr.bf16.mxu1 %v1812_v8  ;;  %v3512_v8 = vld [vmem:[%s3788_s25 + $0x80] sm:$0xff]  }
 0x49b   : > { %v3178_v28 = vpop.f32.mrf.mxu0 }
 0x49d   : > { %v3179_v26 = vpop.f32.mrf.mxu0 }
 0x49e   : > { %v3180_v43 = vadd.f32 %v3179_v26, %v3178_v28  ;;  %v1956_v28 = vld [vmem:[%s3793_s1] sm:$0x7]  ;;  %v4684_v26 = vsub.s32 0, %v3858_v53  ;;  %s4687_s1 = scalar_lea.vmem %s4646_s13, %s3750_s17 }
 0x49f   : > { %v3181_v36 = vpop.f32.mrf.mxu0 }
 0x4a1   : > { %v3182_v30 = vpop.f32.mrf.mxu0 }
 0x4a2   : > { %v3183_v31 = vadd.f32 %v3182_v30, %v3181_v36  ;;  %v1961_v36 = vrot.slane %v1956_v28, %v4684_v26  ;;  %v4685_v30 = vsub.s32 2, %v3858_v53 }
 0x4a4   : > { %v1813_v13 = vpack.c.bf16 %v3183_v31, %v3180_v43  ;;  %v1969_v43 = vrot.slane %v1956_v28, %v4685_v30  ;;  %v4686_v31 = vsub.s32 1, %v3858_v53 }
 0x4a6   : > { %3289 = vmatmul.mubr.bf16.vlgmr.msra.gmra.mxu1 %v1813_v13  ;;  %v1965_v13 = vrot.slane %v1956_v28, %v4686_v31 }
 0x4a7   : > { %3293 = vmatpush3.bf16.msra.mxu1 %v3460_v23  ;;  %v3497_v23 = vld [vmem:[%s3788_s25 + $0xa8] sm:$0xff]  }
 0x4a8   : > { %3294 = vmatprep.subr.bf16.mxu1 %v3464_v34 }
 0x4ab   : > { %3295 = vmatpush3.bf16.msra.mxu1 %v3464_v34 }
 0x4ac   : > { %3296 = vmatprep.subr.bf16.mxu1 %v3468_v35 }
 0x4af   : > { %3297 = vmatpush3.bf16.msra.mxu1 %v3468_v35 }
 0x4b0   : > { %3298 = vmatprep.subr.bf16.mxu1 %v3472_v41 }
 0x4b3   : > { %3299 = vmatpush3.bf16.msra.mxu1 %v3472_v41 }
 0x4b4   : > { %3300 = vmatprep.subr.bf16.mxu1 %v3476_v14 }
 0x4b7   : > { %3301 = vmatpush3.bf16.msra.mxu1 %v3476_v14 }
 0x4b8   : > { %3302 = vmatprep.subr.bf16.mxu1 %v3480_v49 }
 0x4bb   : > { %3303 = vmatpush3.bf16.msra.mxu1 %v3480_v49 }
 0x4bc   : > { %3304 = vmatprep.subr.bf16.mxu1 %v3484_v38 }
 0x4bf   : > { %3305 = vmatpush3.bf16.msra.mxu1 %v3484_v38 }
 0x4c0   : > { %3306 = vmatprep.subr.bf16.mxu1 %v3488_v15 }
 0x4c3   : > { %3307 = vmatpush3.bf16.msra.mxu1 %v3488_v15 }
 0x4c4   : > { %3312 = vmatprep.subr.bf16.mxu1 %v3491_v12 }
 0x566   : > { %v3290_v46 = vpop.f32.mrf.mxu1 }
 0x567   : > { %v1912_v22 = vadd.f32 %v3290_v46, %v3019_v27 }
 0x568   : > { %v1903_v7 = vpop.f32.mrf.mxu1 }
 0x569   : > { %v1904_v37 = vadd.f32 %v3019_v27, %v1903_v7  ;;  %v4506_v4 = vadd.f32 %v3580_v2, %v1912_v22 }
 0x56a   : > { %v3291_v42 = vpop.f32.mrf.mxu1 }
 0x56b   : > { %v1915_v21 = vadd.f32 %v3291_v42, %v3019_v27  ;;  %v4502_v60 = vadd.f32 %v3578_v59, %v1904_v37 }
 0x56c   : > { %v1906_v50 = vpop.f32.mrf.mxu1 }
 0x56d   : > { %v1907_v51 = vadd.f32 %v3019_v27, %v1906_v50  ;;  %v4500_v58 = vadd.f32 %v3577_v52, %v1915_v21 }
 0x56f   : > { %v4504_v1 = vadd.f32 %v3579_v0, %v1907_v51  ;;  %v1955_v9 = vpack.c.bf16 %v4500_v58, %v4506_v4 }
 0x571   : > { %v1954_v5 = vpack.c.bf16 %v4504_v1, %v4502_v60 }
 0x573   : > { %2134 = vmatmul.mubr.bf16.vlgmr.msra.gmra.mxu0 %v1954_v5  ;;  %3308 = vmatprep.mubr.bf16.mxu1 %v1954_v5 }
 0x574   : > { %3309 = vmatmul.mubr.bf16.vlgmr.msra.gmra.mxu1 %v1955_v9  ;;  %2143 = vmatprep.mubr.bf16.mxu0 %v4682_v3  ;;  %v3495_v3 = vld [vmem:[%s3788_s25 + $0x68] sm:$0xff]  }
 0x575   : > { %3205 = vmatpush3.bf16.msra.mxu0 %v3490_v45  ;;  %3313 = vmatpush3.bf16.msra.mxu1 %v3491_v12 }
 0x576   : > { %3206 = vmatprep.subr.bf16.mxu0 %v3492_v16  ;;  %3314 = vmatprep.subr.bf16.mxu1 %v3494_v18 }
 0x579   : > { %3207 = vmatpush3.bf16.msra.mxu0 %v3493_v17  ;;  %3315 = vmatpush3.bf16.msra.mxu1 %v3494_v18 }
 0x57a   : > { %3208 = vmatprep.subr.bf16.mxu0 %v3495_v3  ;;  %3316 = vmatprep.subr.bf16.mxu1 %v3497_v23 }
 0x57b   : > { %2144 = vmatmul.mubr.bf16.gmra.mxu0 %v1955_v9 }
 0x57d   : > { %3209 = vmatpush3.bf16.msra.mxu0 %v3496_v19  ;;  %3317 = vmatpush3.bf16.msra.mxu1 %v3497_v23 }
 0x57e   : > { %3210 = vmatprep.subr.bf16.mxu0 %v3498_v24  ;;  %3318 = vmatprep.subr.bf16.mxu1 %v3500_v29 }
 0x581   : > { %3211 = vmatpush3.bf16.msra.mxu0 %v3499_v25  ;;  %3319 = vmatpush3.bf16.msra.mxu1 %v3500_v29 }
 0x582   : > { %3212 = vmatprep.subr.bf16.mxu0 %v3501_v39  ;;  %3320 = vmatprep.subr.bf16.mxu1 %v3503_v62 }
 0x585   : > { %3213 = vmatpush3.bf16.msra.mxu0 %v3502_v44  ;;  %3321 = vmatpush3.bf16.msra.mxu1 %v3503_v62 }
 0x586   : > { %3214 = vmatprep.subr.bf16.mxu0 %v3504_v63  ;;  %3322 = vmatprep.subr.bf16.mxu1 %v3506_v11 }
 0x589   : > { %3215 = vmatpush3.bf16.msra.mxu0 %v3505_v33  ;;  %3323 = vmatpush3.bf16.msra.mxu1 %v3506_v11 }
 0x58a   : > { %3216 = vmatprep.subr.bf16.mxu0 %v3507_v32  ;;  %3324 = vmatprep.subr.bf16.mxu1 %v3509_v54 }
 0x58d   : > { %3217 = vmatpush3.bf16.msra.mxu0 %v3508_v40  ;;  %3325 = vmatpush3.bf16.msra.mxu1 %v3509_v54 }
 0x58e   : > { %3218 = vmatprep.subr.bf16.mxu0 %v3510_v55  ;;  %3326 = vmatprep.subr.bf16.mxu1 %v3512_v8 }
 0x591   : > { %3219 = vmatpush3.bf16.msra.mxu0 %v3511_v6  ;;  %3327 = vmatpush3.bf16.msra.mxu1 %v3512_v8 }
 0x633   : > { %v2135_v34 = vpop.f32.mrf.mxu0 }
 0x634   : > { %v2136_v35 = vadd.f32 %v2135_v34, %v1961_v36  ;;  %v3310_v41 = vpop.f32.mrf.mxu1 }
 0x635   : > { %v4544_v14 = vadd.f32 %v3310_v41, %v1969_v43  ;;  %v2137_v47 = vpop.f32.mrf.mxu0 }
 0x636   : > { %v2215_v61 = vmul.f32 0.70710677, %v2136_v35  ;;  %v2138_v49 = vadd.f32 %v2137_v47, %v1965_v13  ;;  %v2188_v56 = vpop.f32.mrf.mxu1  ;;  %v2203_v44 = vmul.f32 0.5, %v2136_v35 }
 0x637   : > { %v2223_v20 = vmul.f32 0.70710677, %v4544_v14  ;;  %v2189_v38 = vadd.f32 %v2188_v56, %v1969_v43  ;;  %v2139_v57 = vpop.f32.mrf.mxu0  ;;  %v2211_v34 = vmul.f32 0.5, %v4544_v14 }
 0x638   : > { %3545 = verf.f32 %v2215_v61  ;;  %v2216_v48 = vmul.f32 0.70710677, %v2138_v49  ;;  %v2140_v15 = vadd.f32 %v2139_v57, %v1961_v36  ;;  %v3311_v46 = vpop.f32.mrf.mxu1  ;;  %v2204_v62 = vmul.f32 0.5, %v2138_v49 }
 0x639   : > { %3547 = verf.f32 %v2223_v20  ;;  %v2217_v53 = vmul.f32 0.70710677, %v2189_v38  ;;  %v2200_v7 = vadd.f32 %v3311_v46, %v1969_v43  ;;  %v2141_v27 = vpop.f32.mrf.mxu0  ;;  %v2205_v30 = vmul.f32 0.5, %v2189_v38 }
 0x63a   : > { %3549 = verf.f32 %v2216_v48  ;;  %v2218_v42 = vmul.f32 0.70710677, %v2140_v15  ;;  %v2142_v37 = vadd.f32 %v2141_v27, %v1965_v13  ;;  %v2191_v21 = vpop.f32.mrf.mxu1  ;;  %v2206_v54 = vmul.f32 0.5, %v2140_v15 }
 0x63b   : > { %3551 = verf.f32 %v2217_v53  ;;  %v2226_v22 = vmul.f32 0.70710677, %v2200_v7  ;;  %v2192_v50 = vadd.f32 %v2191_v21, %v1969_v43  ;;  %v2145_v51 = vpop.f32.mrf.mxu0  ;;  %v2214_v28 = vmul.f32 0.5, %v2200_v7 }
 0x63c   : > { %3553 = verf.f32 %v2218_v42  ;;  %v2219_v52 = vmul.f32 0.70710677, %v2142_v37  ;;  %v4547_v59 = vadd.f32 %v2145_v51, %v1961_v36  ;;  %v2207_v26 = vmul.f32 0.5, %v2142_v37 }
 0x63d   : > { %3555 = verf.f32 %v2226_v22  ;;  %v2220_v0 = vmul.f32 0.70710677, %v2192_v50  ;;  %v2147_v2 = vpop.f32.mrf.mxu0  ;;  %v2208_v31 = vmul.f32 0.5, %v2192_v50 }
 0x63e   : > { %3557 = verf.f32 %v2219_v52  ;;  %v2148_v5 = vadd.f32 %v2147_v2, %v1965_v13  ;;  %v2221_v9 = vmul.f32 0.70710677, %v4547_v59  ;;  %v2209_v52 = vmul.f32 0.5, %v4547_v59  ;;  %v3076_v59 = vld [vmem:[%s4687_s1] ss:$0 sm:$0xff] }
 0x63f   : > { %3559 = verf.f32 %v2220_v0  ;;  %v2149_v10 = vpop.f32.mrf.mxu0 }
 0x640   : > { %v2222_v45 = vmul.f32 0.70710677, %v2148_v5  ;;  %v2150_v12 = vadd.f32 %v2149_v10, %v1961_v36  ;;  %v2210_v22 = vmul.f32 0.5, %v2148_v5 }
 0x641   : > { %v2151_v16 = vpop.f32.mrf.mxu0 }
 0x642   : > { %3561 = verf.f32 %v2222_v45  ;;  %v2224_v17 = vmul.f32 0.70710677, %v2150_v12  ;;  %v2152_v18 = vadd.f32 %v2151_v16, %v1965_v13  ;;  %v2212_v14 = vmul.f32 0.5, %v2150_v12 }
 0x643   : > { %3563 = verf.f32 %v2221_v9 }
 0x644   : > { %3565 = verf.f32 %v2224_v17  ;;  %v2225_v3 = vmul.f32 0.70710677, %v2152_v18  ;;  %v2213_v50 = vmul.f32 0.5, %v2152_v18 }
 0x645   : > { %v3546_v19 = vpop.eup %3545 }
 0x646   : > { %v3548_v23 = vpop.eup %3547  ;;  %3567 = verf.f32 %v2225_v3  ;;  %v2239_v32 = vadd.f32 1.0, %v3546_v19 }
 0x647   : > { %v3550_v24 = vpop.eup %3549  ;;  %v2247_v8 = vadd.f32 1.0, %v3548_v23 }
 0x648   : > { %v3552_v25 = vpop.eup %3551  ;;  %v2240_v63 = vadd.f32 1.0, %v3550_v24  ;;  %v2251_v49 = vmul.f32 %v2239_v32, %v2203_v44 }
 0x649   : > { %v3554_v29 = vpop.eup %3553  ;;  %v2241_v40 = vadd.f32 1.0, %v3552_v25  ;;  %v2259_v48 = vmul.f32 %v2247_v8, %v2211_v34 }
 0x64a   : > { %v3556_v39 = vpop.eup %3555  ;;  %v2242_v33 = vadd.f32 1.0, %v3554_v29  ;;  %v2252_v35 = vmul.f32 %v2240_v63, %v2204_v62 }
 0x64b   : > { %v3558_v11 = vpop.eup %3557  ;;  %v2250_v55 = vadd.f32 1.0, %v3556_v39  ;;  %v2253_v56 = vmul.f32 %v2241_v40, %v2205_v30 }
 0x64c   : > { %v3560_v6 = vpop.eup %3559  ;;  %v2243_v36 = vadd.f32 1.0, %v3558_v11  ;;  %v2254_v43 = vmul.f32 %v2242_v33, %v2206_v54 }
 0x64d   : > { %v2244_v13 = vadd.f32 1.0, %v3560_v6  ;;  %v2262_v41 = vmul.f32 %v2250_v55, %v2214_v28 }
 0x64e   : > { %v2255_v47 = vmul.f32 %v2243_v36, %v2207_v26  ;;  %v2311_v53 = vpack.c.bf16 %v2254_v43, %v2251_v49 }
 0x64f   : > { %v3562_v61 = vpop.eup %3561  ;;  %v2256_v20 = vmul.f32 %v2244_v13, %v2208_v31  ;;  %v2316_v27 = vpack.c.bf16 %v2262_v41, %v2259_v48 }
 0x650   : > { %v3564_v57 = vpop.eup %3563  ;;  %v2312_v15 = vpack.c.bf16 %v2255_v47, %v2252_v35  ;;  %v2246_v38 = vadd.f32 1.0, %v3562_v61  ;;  %v3077_v35 = vld [vmem:[%s699_s3] ss:$0 sm:$0xff] }
 0x651   : > { %v3566_v46 = vpop.eup %3565  ;;  %v2313_v7 = vpack.c.bf16 %v2256_v20, %v2253_v56  ;;  %v2245_v21 = vadd.f32 1.0, %v3564_v57 }
 0x652   : > { %v2248_v42 = vadd.f32 1.0, %v3566_v46  ;;  %2493 = vmatprep.mubr.bf16.mxu0 %v2312_v15  ;;  %v2258_v2 = vmul.f32 %v2246_v38, %v2210_v22 }
 0x653   : > { %v3568_v37 = vpop.eup %3567  ;;  %2494 = vmatmul.mubr.bf16.vlgmr.msra.gmra.mxu0 %v2311_v53  ;;  %3328 = vmatprep.mubr.bf16.mxu1 %v2313_v7  ;;  %v2257_v10 = vmul.f32 %v2245_v21, %v2209_v52 }
 0x654   : > { %v2249_v51 = vadd.f32 1.0, %v3568_v37  ;;  %3329 = vmatmul.mubr.bf16.vlgmr.msra.gmra.mxu1 %v2316_v27  ;;  %v2260_v0 = vmul.f32 %v2248_v42, %v2212_v14 }
 0x656   : > { %v2261_v9 = vmul.f32 %v2249_v51, %v2213_v50  ;;  %v2314_v16 = vpack.c.bf16 %v2260_v0, %v2257_v10 }
 0x658   : > { %v2315_v45 = vpack.c.bf16 %v2261_v9, %v2258_v2 }
 0x65a   : > { %2501 = vmatprep.mubr.bf16.mxu0 %v2315_v45 }
 0x65b   : > { %2502 = vmatmul.mubr.bf16.gmra.mxu0 %v2314_v16 }
 0x713   : > { %v3220_v17 = vpop.f32.mrf.mxu0 }
 0x714   : > { %v3330_v3 = vpop.f32.mrf.mxu1 }
 0x715   : > { %v3221_v12 = vpop.f32.mrf.mxu0 }
 0x716   : > { %v3222_v19 = vadd.f32 %v3221_v12, %v3220_v17  ;;  %v2544_v23 = vpop.f32.mrf.mxu1 }
 0x717   : > { %v3223_v5 = vpop.f32.mrf.mxu0 }
 0x718   : > { %v2545_v18 = vadd.f32 %v3222_v19, %v2544_v23  ;;  %v3331_v24 = vpop.f32.mrf.mxu1 }
 0x719   : > { %v3224_v25 = vpop.f32.mrf.mxu0 }
 0x71a   : > { %v2559_v29 = vadd.f32 %v2545_v18, %v4502_v60  ;;  %v3225_v39 = vadd.f32 %v3224_v25, %v3223_v5  ;;  %v2547_v44 = vpop.f32.mrf.mxu1 }
 0x71b   : > { %v3226_v62 = vpop.f32.mrf.mxu0 }
 0x71c   : > { %v2548_v63 = vadd.f32 %v3225_v39, %v2547_v44  ;;  %v2570_v33 = vadd.f32 %v3076_v59, %v2559_v29 }
 0x71d   : > { %v3227_v11 = vpop.f32.mrf.mxu0 }
 0x71e   : > { %v2560_v32 = vadd.f32 %v2548_v63, %v4504_v1  ;;  %v3228_v40 = vadd.f32 %v3227_v11, %v3226_v62  ;;  %v2574_v54 = vmul.f32 %v2570_v33, %v2570_v33 }
 0x71f   : > { %v3229_v55 = vpop.f32.mrf.mxu0 }
 0x720   : > { %v2553_v6 = vadd.f32 %v3330_v3, %v3228_v40  ;;  %2578 = vadd.xlane.f32.xlu0 %v2574_v54  ;;  %v2571_v8 = vadd.f32 %v3076_v59, %v2560_v32 }
 0x721   : > { %v3230_v28 = vpop.f32.mrf.mxu0 }
 0x722   : > { %v2561_v26 = vadd.f32 %v2553_v6, %v4506_v4  ;;  %v3231_v36 = vadd.f32 %v3230_v28, %v3229_v55  ;;  %v2575_v60 = vmul.f32 %v2571_v8, %v2571_v8 }
 0x724   : > { %v2556_v30 = vadd.f32 %v3331_v24, %v3231_v36  ;;  %2580 = vadd.xlane.f32.xlu1 %v2575_v60  ;;  %v2572_v43 = vadd.f32 %v3076_v59, %v2561_v26 }
 0x726   : > { %v2562_v31 = vadd.f32 %v2556_v30, %v4500_v58  ;;  %v2576_v13 = vmul.f32 %v2572_v43, %v2572_v43 }
 0x728   : > { %2582 = vadd.xlane.f32.xlu0 %v2576_v13  ;;  %v2573_v1 = vadd.f32 %v3076_v59, %v2562_v31 }
 0x72a   : > { %v2577_v34 = vmul.f32 %v2573_v1, %v2573_v1 }
 0x72c   : > { %2584 = vadd.xlane.f32.xlu1 %v2577_v34 }
 0x7a9   : > { %v2579_v41 = vpop.xlane.xlu0 %2578 }
 0x7aa   : > { %v2586_v47 = vmul.f32 0.010416667, %v2579_v41 }
 0x7ac   : > { %v2597_v4 = vadd.f32 %v3077_v35, %v2586_v47 }
 0x7ad   : > { %v2581_v61 = vpop.xlane.xlu1 %2580 }
 0x7ae   : > { %3569 = vrsqrt.f32 %v2597_v4  ;;  %v2587_v49 = vmul.f32 0.010416667, %v2581_v61 }
 0x7b0   : > { %v2598_v56 = vadd.f32 %v3077_v35, %v2587_v49 }
 0x7b1   : > { %v2583_v20 = vpop.xlane.xlu0 %2582 }
 0x7b2   : > { %3571 = vrsqrt.f32 %v2598_v56  ;;  %v2588_v58 = vmul.f32 0.010416667, %v2583_v20 }
 0x7b4   : > { %v2599_v57 = vadd.f32 %v3077_v35, %v2588_v58 }
 0x7b5   : > { %v2585_v48 = vpop.xlane.xlu1 %2584 }
 0x7b6   : > { %3573 = vrsqrt.f32 %v2599_v57  ;;  %v2589_v15 = vmul.f32 0.010416667, %v2585_v48 }
 0x7b8   : > { %v2600_v46 = vadd.f32 %v3077_v35, %v2589_v15 }
 0x7ba   : > { %3575 = vrsqrt.f32 %v2600_v46 }
 0x7bb   : > { %v3570_v53 = vpop.eup %3569 }
 0x7bc   : > { %2607 = vperm.xlu0 %3375, %v3570_v53  }
 0x7bf   : > { %v3572_v7 = vpop.eup %3571 }
 0x7c0   : > { %2612 = vperm.xlu1 %3376, %v3572_v7  }
 0x7c3   : > { %v3574_v27 = vpop.eup %3573 }
 0x7c4   : > { %2617 = vperm.xlu1 %3376, %v3574_v27  }
 0x7c7   : > { %v3576_v38 = vpop.eup %3575 }
 0x7c8   : > { %2622 = vperm.xlu1 %3376, %v3576_v38  }
 0x837   : > { %v2608_v42 = vpop.permute.xlu0 %2607 }
 0x838   : > { %v4566_v37 = vmul.f32 %v2608_v42, %v2570_v33 }
 0x83a   : > { %2629 = vst [vmem:[#allocation2 + $0x10] sm:$0xff] %v4566_v37 }
 0x83b   : > { %v2613_v21 = vpop.permute.xlu1 %2612 }
 0x83c   : > { %v4569_v14 = vmul.f32 %v2613_v21, %v2571_v8 }
 0x83e   : > { %2630 = vst [vmem:[#allocation2] sm:$0xff] %v4569_v14 }
 0x83f   : > { %v2618_v22 = vpop.permute.xlu1 %2617 }
 0x840   : > { %v4572_v50 = vmul.f32 %v2618_v22, %v2572_v43 }
 0x842   : > { %2631 = vst [vmem:[#allocation2 + $0x18] sm:$0xff] %v4572_v50  ;;  %2636 = sbr.rel (%p3078_p5) target bundleno = 2619 (0xa3b), region = 100 }
 0x843   : > { %v2623_v51 = vpop.permute.xlu1 %2622 }
 0x844   : > { %v4575_v52 = vmul.f32 %v2623_v51, %v2573_v1 }
 0x846   : > { %2632 = vst [vmem:[#allocation2 + $0x8] sm:$0xff] %v4575_v52 }
 0x847   : > { %v2637_v0 = vmul.f32 %v4566_v37, %v4566_v37  ;;  %v2639_v2 = vmul.f32 %v4572_v50, %v4572_v50  ;;  %v2638_v9 = vmul.f32 %v4569_v14, %v4569_v14  ;;  %v2640_v10 = vmul.f32 %v4575_v52, %v4575_v52  ;;  %v3583_v16 = vld [vmem:[%s4688_s20 + $0x38] sm:$0xff]   ;;  %v3584_v17 = vld [vmem:[%s4688_s20 + $0x30] sm:$0xff]   ;;  %v3585_v3 = vld [vmem:[%s4688_s20 + $0x28] sm:$0xff]  }
 0x848   : > { %v3636_v45 = vmov 0   ;;  %3332 = vmatprep.subr.bf16.mxu0 %v3583_v16  ;;  %v3586_v12 = vld [vmem:[%s4688_s20 + $0x20] sm:$0xff]   ;;  %v3587_v11 = vld [vmem:[%s4688_s20 + $0x18] sm:$0xff]   ;;  %v3588_v32 = vld [vmem:[%s4688_s20 + $0x10] sm:$0xff]  }
 0x849   : > { %2641 = vadd.xlane.f32.xlu0 %v2637_v0  ;;  %2645 = vadd.xlane.f32.xlu1 %v2639_v2  ;;  %v3079_v19 = vld [vmem:[#allocation3] ss:$0 sm:$0xff]  ;;  %v3589_v54 = vld [vmem:[%s4688_s20 + $0x8] sm:$0xff]  }
 0x84a   : > { %3581 = vset.pattern.permute.xlu0 %v3636_v45  ;;  %3582 = vset.pattern.permute.xlu1 %v3636_v45  ;;  %v3590_v8 = vld [vmem:[%s4688_s20] sm:$0xff]  }
 0x84b   : > { %3333 = vmatpush3.bf16.msra.mxu0 %v3583_v16  ;;  %v3080_v41 = vld [vmem:[%s4689_s16] ss:$0 sm:$0xff] }
 0x84c   : > { %3334 = vmatprep.subr.bf16.mxu0 %v3584_v17 }
 0x84d   : > { %2643 = vadd.xlane.f32.xlu0 %v2638_v9  ;;  %2647 = vadd.xlane.f32.xlu1 %v2640_v10 }
 0x84f   : > { %3335 = vmatpush3.bf16.msra.mxu0 %v3584_v17 }
 0x850   : > { %3336 = vmatprep.subr.bf16.mxu0 %v3585_v3 }
 0x853   : > { %3337 = vmatpush3.bf16.msra.mxu0 %v3585_v3 }
 0x854   : > { %3338 = vmatprep.subr.bf16.mxu0 %v3586_v12 }
 0x857   : > { %3339 = vmatpush3.bf16.msra.mxu0 %v3586_v12 }
 0x858   : > { %3340 = vmatprep.subr.bf16.mxu0 %v3587_v11 }
 0x85b   : > { %3341 = vmatpush3.bf16.msra.mxu0 %v3587_v11 }
 0x85c   : > { %3342 = vmatprep.subr.bf16.mxu0 %v3588_v32 }
 0x85f   : > { %3343 = vmatpush3.bf16.msra.mxu0 %v3588_v32 }
 0x860   : > { %3344 = vmatprep.subr.bf16.mxu0 %v3589_v54 }
 0x863   : > { %3345 = vmatpush3.bf16.msra.mxu0 %v3589_v54 }
 0x864   : > { %3346 = vmatprep.subr.bf16.mxu0 %v3590_v8 }
 0x867   : > { %3347 = vmatpush3.bf16.msra.mxu0 %v3590_v8 }
 0x8d2   : > { %v2642_v23 = vpop.xlane.xlu0 %2641  ;;  %v2646_v5 = vpop.xlane.xlu1 %2645 }
 0x8d3   : > { %v2649_v18 = vmul.f32 0.010416667, %v2642_v23  ;;  %v2651_v25 = vmul.f32 0.010416667, %v2646_v5 }
 0x8d5   : > { %v2660_v24 = vadd.f32 %v3079_v19, %v2649_v18  ;;  %v2662_v62 = vadd.f32 %v3079_v19, %v2651_v25 }
 0x8d6   : > { %v2644_v59 = vpop.xlane.xlu0 %2643  ;;  %v2648_v29 = vpop.xlane.xlu1 %2647 }
 0x8d7   : > { %3591 = vrsqrt.f32 %v2660_v24  ;;  %v2650_v39 = vmul.f32 0.010416667, %v2644_v59  ;;  %v2652_v63 = vmul.f32 0.010416667, %v2648_v29 }
 0x8d9   : > { %v2661_v44 = vadd.f32 %v3079_v19, %v2650_v39  ;;  %v2663_v33 = vadd.f32 %v3079_v19, %v2652_v63 }
 0x8db   : > { %3593 = vrsqrt.f32 %v2661_v44 }
 0x8dc   : > { %3595 = vrsqrt.f32 %v2662_v62 }
 0x8dd   : > { %3597 = vrsqrt.f32 %v2663_v33 }
 0x8e4   : > { %v3592_v40 = vpop.eup %3591 }
 0x8e5   : > { %2670 = vperm.xlu0 %3581, %v3592_v40  }
 0x8e8   : > { %v3594_v55 = vpop.eup %3593 }
 0x8e9   : > { %2675 = vperm.xlu1 %3582, %v3594_v55   ;;  %v3596_v6 = vpop.eup %3595 }
 0x8ea   : > { %v3598_v28 = vpop.eup %3597 }
 0x8ed   : > { %2680 = vperm.xlu1 %3582, %v3596_v6  }
 0x8f1   : > { %2685 = vperm.xlu1 %3582, %v3598_v28  }
 0x960   : > { %v2671_v26 = vpop.permute.xlu0 %2670 }
 0x961   : > { %v2688_v60 = vmul.f32 %v2671_v26, %v4566_v37 }
 0x964   : > { %v2676_v36 = vpop.permute.xlu1 %2675 }
 0x965   : > { %v2689_v30 = vmul.f32 %v2676_v36, %v4569_v14 }
 0x967   : > { %v2708_v43 = vpack.c.bf16 %v2689_v30, %v2688_v60 }
 0x968   : > { %v2681_v31 = vpop.permute.xlu1 %2680 }
 0x969   : > { %3348 = vmatprep.mubr.bf16.mxu0 %v2708_v43  ;;  %v2690_v1 = vmul.f32 %v2681_v31, %v4572_v50 }
 0x96c   : > { %v2686_v13 = vpop.permute.xlu1 %2685 }
 0x96d   : > { %v2691_v34 = vmul.f32 %v2686_v13, %v4575_v52 }
 0x96f   : > { %v2709_v35 = vpack.c.bf16 %v2691_v34, %v2690_v1 }
 0x971   : > { %3349 = vmatmul.mubr.bf16.vlgmr.msra.gmra.mxu0 %v2709_v35 }
 0xa31   : > { %v3350_v47 = vpop.f32.mrf.mxu0 }
 0xa32   : > { %v2808_v4 = vadd.f32 %v3350_v47, %v3080_v41 }
 0xa33   : > { %v2799_v61 = vpop.f32.mrf.mxu0 }
 0xa34   : > { %2816 = vst [vmem:[#allocation4 + $0x10] sm:$0xff] %v2808_v4  ;;  %v2800_v49 = vadd.f32 %v3080_v41, %v2799_v61 }
 0xa35   : > { %v3351_v56 = vpop.f32.mrf.mxu0 }
 0xa36   : > { %2814 = vst [vmem:[#allocation4] sm:$0xff] %v2800_v49  ;;  %v2811_v20 = vadd.f32 %v3351_v56, %v3080_v41 }
 0xa37   : > { %v2802_v58 = vpop.f32.mrf.mxu0 }
 0xa38   : > { %2817 = vst [vmem:[#allocation4 + $0x18] sm:$0xff] %v2811_v20  ;;  %v2803_v57 = vadd.f32 %v3080_v41, %v2802_v58 }
 0xa3a   : > { %2815 = vst [vmem:[#allocation4 + $0x8] sm:$0xff] %v2803_v57 }
 0xa3b PF: > { %p3360_p6 = scmp.eq.s32.totalorder %s3744_s30, 1  ;;  %s3637_s23 = smov [#allocation4]  }
 0xa3c   : > { %s2824_s15 = sshll.u32 %s3637_s23, 4  ;;  %s2825_s15 = int_to_ptr.vmem [resolvable:$true] %s2824_s15 }
 0xa3d   : > { %s3599_s27 = scalar_lea.vmem %s2825_s15, 512  ;;  %p3606_p10 = scmp.lt.s32.totalorder %s2825_s15, %s2825_s15 }
 0xa3e   : > { %p3600_p7 = scmp.ne.s32.totalorder %s2825_s15, %s3599_s27  ;;  %p3607_p11 = scmp.lt.s32.totalorder %s3599_s27, %s3599_s27 }
 0xa40   : > { %p3601_p8 = pnand %p3600_p7, %p3360_p6  ;;  %p3608_p12 = por %p3607_p11, %p3606_p10 }
 0xa42   : > { %p3602_p9 = pneg %p3601_p8 }
 0xa44   : > { %p3609_p13 = pnand %p3608_p12, %p3602_p9 }
 0xa46   : > { %3612 = shalt.err (!%p3609_p13)
}
 0xa47   : > { %s3638_s22 = smov 128   ;;  %s3639_s18 = smov 8  }
 0xa48   : > { %s4690_s25 = sld [smem:[#allocation15_spill]] }
 0xa4e   : > { %3357 = dma.vmem_to_hbm [thread:$0]  (%p3360_p6), %s2825_s15, 512, %s4690_s25, [#allocation5], %s3638_s22, %s3638_s22, %s3639_s18  }
 0xa4f   : > { %3628 = dma.done.wait (%p3360_p6), [#allocation5], 512  }
 0xa50   : > { %3630 = vsyncadd (%p3360_p6), [#allocation5], 4294966784 }
 0xa51 PF: > { %s4691_s1 = sld [smem:[#allocation7_spill]] }
 0xa57   : > { %s31_s29 = sadd.s32 1, %s4691_s1  }
 0xa58   : > { %p28_p0 = scmp.ge.s32.totalorder %s31_s29, 4  }
 0xa5a   :  { %30 = sbr.rel (!%p28_p0) target bundleno = 10 (0xa), region = 151 }
 0xa5f   :  { %2840 = vsyncpa [#allocation5], 1 }
 0xa60   :  { %2842 = vsyncpa [#allocation5 + $0x1], 1 }

</bundles_post_ra>
